<compile_context>
chip_gen: v6e
topology: v6e:2x2x1
jax: 0.10.0
libtpu: 0.0.40
codegen_flags: <defaults>
</compile_context>

<pallas_src>
from functools import partial

import jax
import jax.numpy as jnp
from jax.experimental import pallas as pl
from jax.experimental.pallas import tpu as pltpu


def _round_up(x, m):
    return (x + m - 1) // m * m


def _pick_time_chunk(T, max_chunk=32):
    c = min(T, max_chunk)
    while T % c:
        c -= 1
    return c


def _lstm_recurrent_kernel(pre_ref, whh_ref, hseq_ref, cout_ref,
                           h_state, c_state):
    """Recurrent part of one LSTM layer for one time chunk.

    pre_ref  : (Tc, Bp, 4*Hp)  pre-activations x·W_ih^T + b (f32, gate-padded)
    whh_ref  : (Hp, 4*Hp)      W_hh^T (padded, compute dtype)
    hseq_ref : (Tc, Bp, Hp)    hidden outputs for this chunk (f32)
    cout_ref : (Bp, Hp)        cell state (resident, constant block index)
    h_state, c_state : (Bp, Hp) f32 carry scratch across chunks
    """
    @pl.when(pl.program_id(0) == 0)
    def _():
        h_state[...] = jnp.zeros_like(h_state)
        c_state[...] = jnp.zeros_like(c_state)

    w = whh_ref[...]                      # resident weight tile
    Hp = h_state.shape[-1]
    Tc = hseq_ref.shape[0]

    def step(t, carry):
        h, c = carry
        gates = pre_ref[t] + jnp.dot(h.astype(w.dtype), w,
                                     preferred_element_type=jnp.float32)
        # lane-aligned gate slabs (Hp is a multiple of 128)
        i_g = jax.nn.sigmoid(gates[:, 0 * Hp:1 * Hp])
        f_g = jax.nn.sigmoid(gates[:, 1 * Hp:2 * Hp])
        g_g = jnp.tanh(gates[:, 2 * Hp:3 * Hp])
        o_g = jax.nn.sigmoid(gates[:, 3 * Hp:4 * Hp])
        c = f_g * c + i_g * g_g
        h = o_g * jnp.tanh(c)
        hseq_ref[t] = h
        return h, c

    h, c = jax.lax.fori_loop(0, Tc, step,
                             (h_state[...], c_state[...]), unroll=True)
    h_state[...] = h
    c_state[...] = c
    cout_ref[...] = c


def lstm_layer(x_tbd, w_ih, w_hh, b_ih, b_hh, *,
               compute_dtype=jnp.float32, max_time_chunk=32):
    """One LSTM layer over the whole sequence.

    x_tbd : (T, B, D_in) time-major f32 input
    w_ih  : (4H, D_in), w_hh : (4H, H), b_ih/b_hh : (4H,)
    returns (h_seq (T,B,H), h_n (B,H), c_n (B,H)), all f32
    """
    T, B, D = x_tbd.shape
    H = w_hh.shape[1]
    Hp = _round_up(H, 128)           # lane-aligned per-gate width
    Bp = _round_up(B, 8)             # fill sublanes
    Tc = _pick_time_chunk(T, max_time_chunk)

    # ---- hoisted input projection: one matmul over all T*B rows ------------
    wih_t = jnp.transpose(w_ih).astype(compute_dtype)            # (D, 4H)
    preact = jnp.dot(x_tbd.reshape(T * B, D).astype(compute_dtype), wih_t,
                     preferred_element_type=jnp.float32)
    preact = preact.reshape(T, B, 4 * H) + (b_ih + b_hh).astype(jnp.float32)

    # ---- pad: each gate -> its own Hp-wide lane slab, batch -> sublanes ----
    pre = preact.reshape(T, B, 4, H)
    pre = jnp.pad(pre, ((0, 0), (0, Bp - B), (0, 0), (0, Hp - H)))
    pre = pre.reshape(T, Bp, 4 * Hp)                             # f32

    whh = jnp.transpose(w_hh.reshape(4, H, H), (2, 0, 1))        # (H, 4, H)
    whh = jnp.pad(whh, ((0, Hp - H), (0, 0), (0, Hp - H)))
    whh = whh.reshape(Hp, 4 * Hp).astype(compute_dtype)          # (Hp, 4Hp)

    # ---- VMEM budget (double-buffered inputs/outputs + scratch), capped ----
    wbytes = jnp.dtype(compute_dtype).itemsize
    footprint = (2 * Tc * Bp * 4 * Hp * 4        # preact chunk blocks
                 + 2 * Hp * 4 * Hp * wbytes      # W_hh^T
                 + 2 * Tc * Bp * Hp * 4          # h_seq chunk blocks
                 + 2 * Bp * Hp * 4               # c_n block
                 + 2 * Bp * Hp * 4)              # h/c carry scratch
    vmem_limit = int(min(max(2 * footprint + (8 << 20), 32 << 20), 64 << 20))

    grid_spec = pltpu.PrefetchScalarGridSpec(
        num_scalar_prefetch=0,
        grid=(T // Tc,),
        in_specs=[
            pl.BlockSpec((Tc, Bp, 4 * Hp), lambda t: (t, 0, 0)),
            pl.BlockSpec((Hp, 4 * Hp), lambda t: (0, 0)),
        ],
        out_specs=(
            pl.BlockSpec((Tc, Bp, Hp), lambda t: (t, 0, 0)),
            pl.BlockSpec((Bp, Hp), lambda t: (0, 0)),
        ),
        scratch_shapes=[
            pltpu.VMEM((Bp, Hp), jnp.float32),   # h carry
            pltpu.VMEM((Bp, Hp), jnp.float32),   # c carry
        ],
    )

    h_seq_p, c_last_p = pl.pallas_call(
        _lstm_recurrent_kernel,
        out_shape=(
            jax.ShapeDtypeStruct((T, Bp, Hp), jnp.float32),
            jax.ShapeDtypeStruct((Bp, Hp), jnp.float32),
        ),
        grid_spec=grid_spec,
        compiler_params=pltpu.CompilerParams(
            dimension_semantics=("arbitrary",),   # time is a carried loop
            vmem_limit_bytes=vmem_limit),
    )(pre, whh)

    h_seq = h_seq_p[:, :B, :H]
    return h_seq, h_seq[-1], c_last_p[:B, :H]


@partial(jax.jit, static_argnames=("compute_dtype",))
def encoder_forward(x_btd, params, compute_dtype=jnp.float32):
    """Equivalent of Encoder.forward: returns (hidden, cell),
    each of shape (num_layers, batch, hidden_dim)."""
    x_tbd = jnp.transpose(x_btd, (1, 0, 2)).astype(jnp.float32)  # time-major
    hiddens, cells = [], []
    inp = x_tbd
    for (w_ih, w_hh, b_ih, b_hh) in params:
        h_seq, h_n, c_n = lstm_layer(inp, w_ih, w_hh, b_ih, b_hh,
                                     compute_dtype=compute_dtype)
        hiddens.append(h_n)
        cells.append(c_n)
        inp = h_seq                                  # next layer input
    return jnp.stack(hiddens, axis=0), jnp.stack(cells, axis=0)


def _lstm_ref(x_btd, params, H):
    """Pure-JAX reference mirroring torch.nn.LSTM (gate order i,f,g,o)."""
    B, T, _ = x_btd.shape
    inp = x_btd
    hs, cs = [], []
    for (w_ih, w_hh, b_ih, b_hh) in params:
        h = jnp.zeros((B, H), jnp.float32)
        c = jnp.zeros((B, H), jnp.float32)
        outs = []
        for t in range(T):
            g = inp[:, t] @ w_ih.T + h @ w_hh.T + b_ih + b_hh
            i = jax.nn.sigmoid(g[:, :H])
            f = jax.nn.sigmoid(g[:, H:2 * H])
            gg = jnp.tanh(g[:, 2 * H:3 * H])
            o = jax.nn.sigmoid(g[:, 3 * H:])
            c = f * c + i * gg
            h = o * jnp.tanh(c)
            outs.append(h)
        inp = jnp.stack(outs, axis=1)
        hs.append(h)
        cs.append(c)
    return jnp.stack(hs), jnp.stack(cs)


def init_lstm_params(key, input_dim, hidden_dim, num_layers):
    """Deterministic init mimicking PyTorch's U(-1/sqrt(H), 1/sqrt(H))."""
    params = []
    bound = 1.0 / jnp.sqrt(jnp.float32(hidden_dim))
    for layer in range(num_layers):
        d_in = input_dim if layer == 0 else hidden_dim
        key, k1, k2, k3, k4 = jax.random.split(key, 5)
        w_ih = jax.random.uniform(k1, (4 * hidden_dim, d_in), jnp.float32,
                                  -bound, bound)
        w_hh = jax.random.uniform(k2, (4 * hidden_dim, hidden_dim), jnp.float32,
                                  -bound, bound)
        b_ih = jax.random.uniform(k3, (4 * hidden_dim,), jnp.float32,
                                  -bound, bound)
        b_hh = jax.random.uniform(k4, (4 * hidden_dim,), jnp.float32,
                                  -bound, bound)
        params.append((w_ih, w_hh, b_ih, b_hh))
    return params


if __name__ == "__main__":
    B, T = 2, 8
    INPUT_DIM, HIDDEN_DIM, NUM_LAYERS = 4, 32, 2

    key = jax.random.PRNGKey(0)
    key, kx = jax.random.split(key)
    x = jax.random.normal(kx, (B, T, INPUT_DIM), jnp.float32)  # batch_first
    params = init_lstm_params(key, INPUT_DIM, HIDDEN_DIM, NUM_LAYERS)

    h_ref, c_ref = _lstm_ref(x, params, HIDDEN_DIM)

    # f32 path: tight check against torch.nn.LSTM semantics
    hidden, cell = encoder_forward(x, params, compute_dtype=jnp.float32)
    jax.block_until_ready((hidden, cell))
    assert hidden.shape == (NUM_LAYERS, B, HIDDEN_DIM)
    assert cell.shape == (NUM_LAYERS, B, HIDDEN_DIM)
    assert jnp.allclose(hidden, h_ref, atol=1e-4, rtol=1e-4)
    assert jnp.allclose(cell, c_ref, atol=1e-4, rtol=1e-4)

    # bf16-weight path (MXU fast path on v6e/v7x): loose check
    hidden_bf, cell_bf = encoder_forward(x, params, compute_dtype=jnp.bfloat16)
    jax.block_until_ready((hidden_bf, cell_bf))
    assert jnp.allclose(hidden_bf, h_ref, atol=5e-2, rtol=5e-2)
    assert jnp.allclose(cell_bf, c_ref, atol=5e-2, rtol=5e-2)

    print("KERNEL_OK")
</pallas_src>

<mosaic_0001>
module attributes {stable_mosaic.version = 11 : i64} {
  func.func @_lstm_recurrent_kernel(%arg0: i32, %arg1: memref<8x8x512xf32, #tpu.memory_space<vmem>>, %arg2: memref<128x512xf32, #tpu.memory_space<vmem>>, %arg3: memref<8x8x128xf32, #tpu.memory_space<vmem>>, %arg4: memref<8x128xf32, #tpu.memory_space<vmem>>, %arg5: memref<8x128xf32, #tpu.memory_space<vmem>>, %arg6: memref<8x128xf32, #tpu.memory_space<vmem>>) attributes {dimension_semantics = [#tpu.dimension_semantics<arbitrary>], iteration_bounds = array<i64: 1>, scalar_prefetch = 0 : i64, scratch_operands = 2 : i64, tpu.core_type = #tpu.core_type<tc>, window_params = [{transform_indices = @transform_0, window_bounds = array<i64: 8, 8, 512>}, {pipeline_mode = #tpu.pipeline_mode<synchronous>, transform_indices = @transform_1, window_bounds = array<i64: 128, 512>}, {transform_indices = @transform_2, window_bounds = array<i64: 8, 8, 128>}, {pipeline_mode = #tpu.pipeline_mode<synchronous>, transform_indices = @transform_3, window_bounds = array<i64: 8, 128>}]} {
    %c0_i32 = arith.constant 0 : i32
    %0 = arith.cmpi eq, %arg0, %c0_i32 : i32
    %1 = arith.extui %0 : i1 to i32
    %c0_i32_0 = arith.constant 0 : i32
    %2 = arith.cmpi ne, %1, %c0_i32_0 : i32
    scf.if %2 {
      %cst_76 = arith.constant 0.000000e+00 : f32
      %281 = vector.broadcast %cst_76 : f32 to vector<8x128xf32>
      %c0_77 = arith.constant 0 : index
      %c0_78 = arith.constant 0 : index
      %282 = vector.load %arg5[%c0_77, %c0_78] : memref<8x128xf32, #tpu.memory_space<vmem>>, vector<8x128xf32>
      tpu.vector_store %arg5[%c0_77, %c0_78], %281 {strides = array<i32>} : memref<8x128xf32, #tpu.memory_space<vmem>>, vector<8x128xf32>,
      %cst_79 = arith.constant 0.000000e+00 : f32
      %283 = vector.broadcast %cst_79 : f32 to vector<8x128xf32>
      %c0_80 = arith.constant 0 : index
      %c0_81 = arith.constant 0 : index
      %284 = vector.load %arg6[%c0_80, %c0_81] : memref<8x128xf32, #tpu.memory_space<vmem>>, vector<8x128xf32>
      tpu.vector_store %arg6[%c0_80, %c0_81], %283 {strides = array<i32>} : memref<8x128xf32, #tpu.memory_space<vmem>>, vector<8x128xf32>,
    } else {
    }
    %c0 = arith.constant 0 : index
    %c0_1 = arith.constant 0 : index
    %3 = vector.load %arg2[%c0, %c0_1] : memref<128x512xf32, #tpu.memory_space<vmem>>, vector<128x512xf32>
    %c0_2 = arith.constant 0 : index
    %c0_3 = arith.constant 0 : index
    %4 = vector.load %arg5[%c0_2, %c0_3] : memref<8x128xf32, #tpu.memory_space<vmem>>, vector<8x128xf32>
    %c0_4 = arith.constant 0 : index
    %c0_5 = arith.constant 0 : index
    %5 = vector.load %arg6[%c0_4, %c0_5] : memref<8x128xf32, #tpu.memory_space<vmem>>, vector<8x128xf32>
    %c0_i32_6 = arith.constant 0 : i32
    %6 = arith.index_cast %c0_i32_6 : i32 to index
    %c0_7 = arith.constant 0 : index
    %c0_8 = arith.constant 0 : index
    %7 = vector.load %arg1[%6, %c0_7, %c0_8] : memref<8x8x512xf32, #tpu.memory_space<vmem>>, vector<1x8x512xf32>
    %8 = vector.shape_cast %7 : vector<1x8x512xf32> to vector<8x512xf32>
    %cst = arith.constant dense<0.000000e+00> : vector<8x512xf32>
    %9 = tpu.matmul %4, %3, %cst {dimension_numbers = #tpu.dot_dimension_numbers<[1], [0], [0], [1], [0, 0, 1, 1], [], []>} : vector<8x128xf32>, vector<128x512xf32>, vector<8x512xf32> -> vector<8x512xf32>
    %10 = arith.addf %8, %9 : vector<8x512xf32>
    %11 = vector.extract_strided_slice %10 {offsets = [0, 0], sizes = [8, 128], strides = [1, 1]} : vector<8x512xf32> to vector<8x128xf32>
    %12 = arith.negf %11 : vector<8x128xf32>
    %13 = math.exp %12 : vector<8x128xf32>
    %cst_9 = arith.constant 1.000000e+00 : f32
    %14 = vector.broadcast %cst_9 : f32 to vector<8x128xf32>
    %15 = arith.addf %14, %13 : vector<8x128xf32>
    %16 = arith.divf %14, %15 : vector<8x128xf32>
    %17 = vector.extract_strided_slice %10 {offsets = [0, 128], sizes = [8, 128], strides = [1, 1]} : vector<8x512xf32> to vector<8x128xf32>
    %18 = arith.negf %17 : vector<8x128xf32>
    %19 = math.exp %18 : vector<8x128xf32>
    %cst_10 = arith.constant 1.000000e+00 : f32
    %20 = vector.broadcast %cst_10 : f32 to vector<8x128xf32>
    %21 = arith.addf %20, %19 : vector<8x128xf32>
    %22 = arith.divf %20, %21 : vector<8x128xf32>
    %23 = vector.extract_strided_slice %10 {offsets = [0, 256], sizes = [8, 128], strides = [1, 1]} : vector<8x512xf32> to vector<8x128xf32>
    %24 = math.tanh %23 : vector<8x128xf32>
    %25 = vector.extract_strided_slice %10 {offsets = [0, 384], sizes = [8, 128], strides = [1, 1]} : vector<8x512xf32> to vector<8x128xf32>
    %26 = arith.negf %25 : vector<8x128xf32>
    %27 = math.exp %26 : vector<8x128xf32>
    %cst_11 = arith.constant 1.000000e+00 : f32
    %28 = vector.broadcast %cst_11 : f32 to vector<8x128xf32>
    %29 = arith.addf %28, %27 : vector<8x128xf32>
    %30 = arith.divf %28, %29 : vector<8x128xf32>
    %31 = arith.mulf %22, %5 : vector<8x128xf32>
    %32 = arith.mulf %16, %24 : vector<8x128xf32>
    %33 = arith.addf %31, %32 : vector<8x128xf32>
    %34 = math.tanh %33 : vector<8x128xf32>
    %35 = arith.mulf %30, %34 : vector<8x128xf32>
    %36 = arith.index_cast %c0_i32_6 : i32 to index
    %c0_12 = arith.constant 0 : index
    %c0_13 = arith.constant 0 : index
    %37 = vector.load %arg3[%36, %c0_12, %c0_13] : memref<8x8x128xf32, #tpu.memory_space<vmem>>, vector<1x8x128xf32>
    %38 = vector.shape_cast %37 : vector<1x8x128xf32> to vector<8x128xf32>
    %39 = vector.shape_cast %35 : vector<8x128xf32> to vector<1x8x128xf32>
    tpu.vector_store %arg3[%36, %c0_12, %c0_13], %39 {strides = array<i32>} : memref<8x8x128xf32, #tpu.memory_space<vmem>>, vector<1x8x128xf32>,
    %c1_i32 = arith.constant 1 : i32
    %40 = arith.index_cast %c1_i32 : i32 to index
    %c0_14 = arith.constant 0 : index
    %c0_15 = arith.constant 0 : index
    %41 = vector.load %arg1[%40, %c0_14, %c0_15] : memref<8x8x512xf32, #tpu.memory_space<vmem>>, vector<1x8x512xf32>
    %42 = vector.shape_cast %41 : vector<1x8x512xf32> to vector<8x512xf32>
    %cst_16 = arith.constant dense<0.000000e+00> : vector<8x512xf32>
    %43 = tpu.matmul %35, %3, %cst_16 {dimension_numbers = #tpu.dot_dimension_numbers<[1], [0], [0], [1], [0, 0, 1, 1], [], []>} : vector<8x128xf32>, vector<128x512xf32>, vector<8x512xf32> -> vector<8x512xf32>
    %44 = arith.addf %42, %43 : vector<8x512xf32>
    %45 = vector.extract_strided_slice %44 {offsets = [0, 0], sizes = [8, 128], strides = [1, 1]} : vector<8x512xf32> to vector<8x128xf32>
    %46 = arith.negf %45 : vector<8x128xf32>
    %47 = math.exp %46 : vector<8x128xf32>
    %cst_17 = arith.constant 1.000000e+00 : f32
    %48 = vector.broadcast %cst_17 : f32 to vector<8x128xf32>
    %49 = arith.addf %48, %47 : vector<8x128xf32>
    %50 = arith.divf %48, %49 : vector<8x128xf32>
    %51 = vector.extract_strided_slice %44 {offsets = [0, 128], sizes = [8, 128], strides = [1, 1]} : vector<8x512xf32> to vector<8x128xf32>
    %52 = arith.negf %51 : vector<8x128xf32>
    %53 = math.exp %52 : vector<8x128xf32>
    %cst_18 = arith.constant 1.000000e+00 : f32
    %54 = vector.broadcast %cst_18 : f32 to vector<8x128xf32>
    %55 = arith.addf %54, %53 : vector<8x128xf32>
    %56 = arith.divf %54, %55 : vector<8x128xf32>
    %57 = vector.extract_strided_slice %44 {offsets = [0, 256], sizes = [8, 128], strides = [1, 1]} : vector<8x512xf32> to vector<8x128xf32>
    %58 = math.tanh %57 : vector<8x128xf32>
    %59 = vector.extract_strided_slice %44 {offsets = [0, 384], sizes = [8, 128], strides = [1, 1]} : vector<8x512xf32> to vector<8x128xf32>
    %60 = arith.negf %59 : vector<8x128xf32>
    %61 = math.exp %60 : vector<8x128xf32>
    %cst_19 = arith.constant 1.000000e+00 : f32
    %62 = vector.broadcast %cst_19 : f32 to vector<8x128xf32>
    %63 = arith.addf %62, %61 : vector<8x128xf32>
    %64 = arith.divf %62, %63 : vector<8x128xf32>
    %65 = arith.mulf %56, %33 : vector<8x128xf32>
    %66 = arith.mulf %50, %58 : vector<8x128xf32>
    %67 = arith.addf %65, %66 : vector<8x128xf32>
    %68 = math.tanh %67 : vector<8x128xf32>
    %69 = arith.mulf %64, %68 : vector<8x128xf32>
    %70 = arith.index_cast %c1_i32 : i32 to index
    %c0_20 = arith.constant 0 : index
    %c0_21 = arith.constant 0 : index
    %71 = vector.load %arg3[%70, %c0_20, %c0_21] : memref<8x8x128xf32, #tpu.memory_space<vmem>>, vector<1x8x128xf32>
    %72 = vector.shape_cast %71 : vector<1x8x128xf32> to vector<8x128xf32>
    %73 = vector.shape_cast %69 : vector<8x128xf32> to vector<1x8x128xf32>
    tpu.vector_store %arg3[%70, %c0_20, %c0_21], %73 {strides = array<i32>} : memref<8x8x128xf32, #tpu.memory_space<vmem>>, vector<1x8x128xf32>,
    %c2_i32 = arith.constant 2 : i32
    %74 = arith.index_cast %c2_i32 : i32 to index
    %c0_22 = arith.constant 0 : index
    %c0_23 = arith.constant 0 : index
    %75 = vector.load %arg1[%74, %c0_22, %c0_23] : memref<8x8x512xf32, #tpu.memory_space<vmem>>, vector<1x8x512xf32>
    %76 = vector.shape_cast %75 : vector<1x8x512xf32> to vector<8x512xf32>
    %cst_24 = arith.constant dense<0.000000e+00> : vector<8x512xf32>
    %77 = tpu.matmul %69, %3, %cst_24 {dimension_numbers = #tpu.dot_dimension_numbers<[1], [0], [0], [1], [0, 0, 1, 1], [], []>} : vector<8x128xf32>, vector<128x512xf32>, vector<8x512xf32> -> vector<8x512xf32>
    %78 = arith.addf %76, %77 : vector<8x512xf32>
    %79 = vector.extract_strided_slice %78 {offsets = [0, 0], sizes = [8, 128], strides = [1, 1]} : vector<8x512xf32> to vector<8x128xf32>
    %80 = arith.negf %79 : vector<8x128xf32>
    %81 = math.exp %80 : vector<8x128xf32>
    %cst_25 = arith.constant 1.000000e+00 : f32
    %82 = vector.broadcast %cst_25 : f32 to vector<8x128xf32>
    %83 = arith.addf %82, %81 : vector<8x128xf32>
    %84 = arith.divf %82, %83 : vector<8x128xf32>
    %85 = vector.extract_strided_slice %78 {offsets = [0, 128], sizes = [8, 128], strides = [1, 1]} : vector<8x512xf32> to vector<8x128xf32>
    %86 = arith.negf %85 : vector<8x128xf32>
    %87 = math.exp %86 : vector<8x128xf32>
    %cst_26 = arith.constant 1.000000e+00 : f32
    %88 = vector.broadcast %cst_26 : f32 to vector<8x128xf32>
    %89 = arith.addf %88, %87 : vector<8x128xf32>
    %90 = arith.divf %88, %89 : vector<8x128xf32>
    %91 = vector.extract_strided_slice %78 {offsets = [0, 256], sizes = [8, 128], strides = [1, 1]} : vector<8x512xf32> to vector<8x128xf32>
    %92 = math.tanh %91 : vector<8x128xf32>
    %93 = vector.extract_strided_slice %78 {offsets = [0, 384], sizes = [8, 128], strides = [1, 1]} : vector<8x512xf32> to vector<8x128xf32>
    %94 = arith.negf %93 : vector<8x128xf32>
    %95 = math.exp %94 : vector<8x128xf32>
    %cst_27 = arith.constant 1.000000e+00 : f32
    %96 = vector.broadcast %cst_27 : f32 to vector<8x128xf32>
    %97 = arith.addf %96, %95 : vector<8x128xf32>
    %98 = arith.divf %96, %97 : vector<8x128xf32>
    %99 = arith.mulf %90, %67 : vector<8x128xf32>
    %100 = arith.mulf %84, %92 : vector<8x128xf32>
    %101 = arith.addf %99, %100 : vector<8x128xf32>
    %102 = math.tanh %101 : vector<8x128xf32>
    %103 = arith.mulf %98, %102 : vector<8x128xf32>
    %104 = arith.index_cast %c2_i32 : i32 to index
    %c0_28 = arith.constant 0 : index
    %c0_29 = arith.constant 0 : index
    %105 = vector.load %arg3[%104, %c0_28, %c0_29] : memref<8x8x128xf32, #tpu.memory_space<vmem>>, vector<1x8x128xf32>
    %106 = vector.shape_cast %105 : vector<1x8x128xf32> to vector<8x128xf32>
    %107 = vector.shape_cast %103 : vector<8x128xf32> to vector<1x8x128xf32>
    tpu.vector_store %arg3[%104, %c0_28, %c0_29], %107 {strides = array<i32>} : memref<8x8x128xf32, #tpu.memory_space<vmem>>, vector<1x8x128xf32>,
    %c3_i32 = arith.constant 3 : i32
    %108 = arith.index_cast %c3_i32 : i32 to index
    %c0_30 = arith.constant 0 : index
    %c0_31 = arith.constant 0 : index
    %109 = vector.load %arg1[%108, %c0_30, %c0_31] : memref<8x8x512xf32, #tpu.memory_space<vmem>>, vector<1x8x512xf32>
    %110 = vector.shape_cast %109 : vector<1x8x512xf32> to vector<8x512xf32>
    %cst_32 = arith.constant dense<0.000000e+00> : vector<8x512xf32>
    %111 = tpu.matmul %103, %3, %cst_32 {dimension_numbers = #tpu.dot_dimension_numbers<[1], [0], [0], [1], [0, 0, 1, 1], [], []>} : vector<8x128xf32>, vector<128x512xf32>, vector<8x512xf32> -> vector<8x512xf32>
    %112 = arith.addf %110, %111 : vector<8x512xf32>
    %113 = vector.extract_strided_slice %112 {offsets = [0, 0], sizes = [8, 128], strides = [1, 1]} : vector<8x512xf32> to vector<8x128xf32>
    %114 = arith.negf %113 : vector<8x128xf32>
    %115 = math.exp %114 : vector<8x128xf32>
    %cst_33 = arith.constant 1.000000e+00 : f32
    %116 = vector.broadcast %cst_33 : f32 to vector<8x128xf32>
    %117 = arith.addf %116, %115 : vector<8x128xf32>
    %118 = arith.divf %116, %117 : vector<8x128xf32>
    %119 = vector.extract_strided_slice %112 {offsets = [0, 128], sizes = [8, 128], strides = [1, 1]} : vector<8x512xf32> to vector<8x128xf32>
    %120 = arith.negf %119 : vector<8x128xf32>
    %121 = math.exp %120 : vector<8x128xf32>
    %cst_34 = arith.constant 1.000000e+00 : f32
    %122 = vector.broadcast %cst_34 : f32 to vector<8x128xf32>
    %123 = arith.addf %122, %121 : vector<8x128xf32>
    %124 = arith.divf %122, %123 : vector<8x128xf32>
    %125 = vector.extract_strided_slice %112 {offsets = [0, 256], sizes = [8, 128], strides = [1, 1]} : vector<8x512xf32> to vector<8x128xf32>
    %126 = math.tanh %125 : vector<8x128xf32>
    %127 = vector.extract_strided_slice %112 {offsets = [0, 384], sizes = [8, 128], strides = [1, 1]} : vector<8x512xf32> to vector<8x128xf32>
    %128 = arith.negf %127 : vector<8x128xf32>
    %129 = math.exp %128 : vector<8x128xf32>
    %cst_35 = arith.constant 1.000000e+00 : f32
    %130 = vector.broadcast %cst_35 : f32 to vector<8x128xf32>
    %131 = arith.addf %130, %129 : vector<8x128xf32>
    %132 = arith.divf %130, %131 : vector<8x128xf32>
    %133 = arith.mulf %124, %101 : vector<8x128xf32>
    %134 = arith.mulf %118, %126 : vector<8x128xf32>
    %135 = arith.addf %133, %134 : vector<8x128xf32>
    %136 = math.tanh %135 : vector<8x128xf32>
    %137 = arith.mulf %132, %136 : vector<8x128xf32>
    %138 = arith.index_cast %c3_i32 : i32 to index
    %c0_36 = arith.constant 0 : index
    %c0_37 = arith.constant 0 : index
    %139 = vector.load %arg3[%138, %c0_36, %c0_37] : memref<8x8x128xf32, #tpu.memory_space<vmem>>, vector<1x8x128xf32>
    %140 = vector.shape_cast %139 : vector<1x8x128xf32> to vector<8x128xf32>
    %141 = vector.shape_cast %137 : vector<8x128xf32> to vector<1x8x128xf32>
    tpu.vector_store %arg3[%138, %c0_36, %c0_37], %141 {strides = array<i32>} : memref<8x8x128xf32, #tpu.memory_space<vmem>>, vector<1x8x128xf32>,
    %c4_i32 = arith.constant 4 : i32
    %142 = arith.index_cast %c4_i32 : i32 to index
    %c0_38 = arith.constant 0 : index
    %c0_39 = arith.constant 0 : index
    %143 = vector.load %arg1[%142, %c0_38, %c0_39] : memref<8x8x512xf32, #tpu.memory_space<vmem>>, vector<1x8x512xf32>
    %144 = vector.shape_cast %143 : vector<1x8x512xf32> to vector<8x512xf32>
    %cst_40 = arith.constant dense<0.000000e+00> : vector<8x512xf32>
    %145 = tpu.matmul %137, %3, %cst_40 {dimension_numbers = #tpu.dot_dimension_numbers<[1], [0], [0], [1], [0, 0, 1, 1], [], []>} : vector<8x128xf32>, vector<128x512xf32>, vector<8x512xf32> -> vector<8x512xf32>
    %146 = arith.addf %144, %145 : vector<8x512xf32>
    %147 = vector.extract_strided_slice %146 {offsets = [0, 0], sizes = [8, 128], strides = [1, 1]} : vector<8x512xf32> to vector<8x128xf32>
    %148 = arith.negf %147 : vector<8x128xf32>
    %149 = math.exp %148 : vector<8x128xf32>
    %cst_41 = arith.constant 1.000000e+00 : f32
    %150 = vector.broadcast %cst_41 : f32 to vector<8x128xf32>
    %151 = arith.addf %150, %149 : vector<8x128xf32>
    %152 = arith.divf %150, %151 : vector<8x128xf32>
    %153 = vector.extract_strided_slice %146 {offsets = [0, 128], sizes = [8, 128], strides = [1, 1]} : vector<8x512xf32> to vector<8x128xf32>
    %154 = arith.negf %153 : vector<8x128xf32>
    %155 = math.exp %154 : vector<8x128xf32>
    %cst_42 = arith.constant 1.000000e+00 : f32
    %156 = vector.broadcast %cst_42 : f32 to vector<8x128xf32>
    %157 = arith.addf %156, %155 : vector<8x128xf32>
    %158 = arith.divf %156, %157 : vector<8x128xf32>
    %159 = vector.extract_strided_slice %146 {offsets = [0, 256], sizes = [8, 128], strides = [1, 1]} : vector<8x512xf32> to vector<8x128xf32>
    %160 = math.tanh %159 : vector<8x128xf32>
    %161 = vector.extract_strided_slice %146 {offsets = [0, 384], sizes = [8, 128], strides = [1, 1]} : vector<8x512xf32> to vector<8x128xf32>
    %162 = arith.negf %161 : vector<8x128xf32>
    %163 = math.exp %162 : vector<8x128xf32>
    %cst_43 = arith.constant 1.000000e+00 : f32
    %164 = vector.broadcast %cst_43 : f32 to vector<8x128xf32>
    %165 = arith.addf %164, %163 : vector<8x128xf32>
    %166 = arith.divf %164, %165 : vector<8x128xf32>
    %167 = arith.mulf %158, %135 : vector<8x128xf32>
    %168 = arith.mulf %152, %160 : vector<8x128xf32>
    %169 = arith.addf %167, %168 : vector<8x128xf32>
    %170 = math.tanh %169 : vector<8x128xf32>
    %171 = arith.mulf %166, %170 : vector<8x128xf32>
    %172 = arith.index_cast %c4_i32 : i32 to index
    %c0_44 = arith.constant 0 : index
    %c0_45 = arith.constant 0 : index
    %173 = vector.load %arg3[%172, %c0_44, %c0_45] : memref<8x8x128xf32, #tpu.memory_space<vmem>>, vector<1x8x128xf32>
    %174 = vector.shape_cast %173 : vector<1x8x128xf32> to vector<8x128xf32>
    %175 = vector.shape_cast %171 : vector<8x128xf32> to vector<1x8x128xf32>
    tpu.vector_store %arg3[%172, %c0_44, %c0_45], %175 {strides = array<i32>} : memref<8x8x128xf32, #tpu.memory_space<vmem>>, vector<1x8x128xf32>,
    %c5_i32 = arith.constant 5 : i32
    %176 = arith.index_cast %c5_i32 : i32 to index
    %c0_46 = arith.constant 0 : index
    %c0_47 = arith.constant 0 : index
    %177 = vector.load %arg1[%176, %c0_46, %c0_47] : memref<8x8x512xf32, #tpu.memory_space<vmem>>, vector<1x8x512xf32>
    %178 = vector.shape_cast %177 : vector<1x8x512xf32> to vector<8x512xf32>
    %cst_48 = arith.constant dense<0.000000e+00> : vector<8x512xf32>
    %179 = tpu.matmul %171, %3, %cst_48 {dimension_numbers = #tpu.dot_dimension_numbers<[1], [0], [0], [1], [0, 0, 1, 1], [], []>} : vector<8x128xf32>, vector<128x512xf32>, vector<8x512xf32> -> vector<8x512xf32>
    %180 = arith.addf %178, %179 : vector<8x512xf32>
    %181 = vector.extract_strided_slice %180 {offsets = [0, 0], sizes = [8, 128], strides = [1, 1]} : vector<8x512xf32> to vector<8x128xf32>
    %182 = arith.negf %181 : vector<8x128xf32>
    %183 = math.exp %182 : vector<8x128xf32>
    %cst_49 = arith.constant 1.000000e+00 : f32
    %184 = vector.broadcast %cst_49 : f32 to vector<8x128xf32>
    %185 = arith.addf %184, %183 : vector<8x128xf32>
    %186 = arith.divf %184, %185 : vector<8x128xf32>
    %187 = vector.extract_strided_slice %180 {offsets = [0, 128], sizes = [8, 128], strides = [1, 1]} : vector<8x512xf32> to vector<8x128xf32>
    %188 = arith.negf %187 : vector<8x128xf32>
    %189 = math.exp %188 : vector<8x128xf32>
    %cst_50 = arith.constant 1.000000e+00 : f32
    %190 = vector.broadcast %cst_50 : f32 to vector<8x128xf32>
    %191 = arith.addf %190, %189 : vector<8x128xf32>
    %192 = arith.divf %190, %191 : vector<8x128xf32>
    %193 = vector.extract_strided_slice %180 {offsets = [0, 256], sizes = [8, 128], strides = [1, 1]} : vector<8x512xf32> to vector<8x128xf32>
    %194 = math.tanh %193 : vector<8x128xf32>
    %195 = vector.extract_strided_slice %180 {offsets = [0, 384], sizes = [8, 128], strides = [1, 1]} : vector<8x512xf32> to vector<8x128xf32>
    %196 = arith.negf %195 : vector<8x128xf32>
    %197 = math.exp %196 : vector<8x128xf32>
    %cst_51 = arith.constant 1.000000e+00 : f32
    %198 = vector.broadcast %cst_51 : f32 to vector<8x128xf32>
    %199 = arith.addf %198, %197 : vector<8x128xf32>
    %200 = arith.divf %198, %199 : vector<8x128xf32>
    %201 = arith.mulf %192, %169 : vector<8x128xf32>
    %202 = arith.mulf %186, %194 : vector<8x128xf32>
    %203 = arith.addf %201, %202 : vector<8x128xf32>
    %204 = math.tanh %203 : vector<8x128xf32>
    %205 = arith.mulf %200, %204 : vector<8x128xf32>
    %206 = arith.index_cast %c5_i32 : i32 to index
    %c0_52 = arith.constant 0 : index
    %c0_53 = arith.constant 0 : index
    %207 = vector.load %arg3[%206, %c0_52, %c0_53] : memref<8x8x128xf32, #tpu.memory_space<vmem>>, vector<1x8x128xf32>
    %208 = vector.shape_cast %207 : vector<1x8x128xf32> to vector<8x128xf32>
    %209 = vector.shape_cast %205 : vector<8x128xf32> to vector<1x8x128xf32>
    tpu.vector_store %arg3[%206, %c0_52, %c0_53], %209 {strides = array<i32>} : memref<8x8x128xf32, #tpu.memory_space<vmem>>, vector<1x8x128xf32>,
    %c6_i32 = arith.constant 6 : i32
    %210 = arith.index_cast %c6_i32 : i32 to index
    %c0_54 = arith.constant 0 : index
    %c0_55 = arith.constant 0 : index
    %211 = vector.load %arg1[%210, %c0_54, %c0_55] : memref<8x8x512xf32, #tpu.memory_space<vmem>>, vector<1x8x512xf32>
    %212 = vector.shape_cast %211 : vector<1x8x512xf32> to vector<8x512xf32>
    %cst_56 = arith.constant dense<0.000000e+00> : vector<8x512xf32>
    %213 = tpu.matmul %205, %3, %cst_56 {dimension_numbers = #tpu.dot_dimension_numbers<[1], [0], [0], [1], [0, 0, 1, 1], [], []>} : vector<8x128xf32>, vector<128x512xf32>, vector<8x512xf32> -> vector<8x512xf32>
    %214 = arith.addf %212, %213 : vector<8x512xf32>
    %215 = vector.extract_strided_slice %214 {offsets = [0, 0], sizes = [8, 128], strides = [1, 1]} : vector<8x512xf32> to vector<8x128xf32>
    %216 = arith.negf %215 : vector<8x128xf32>
    %217 = math.exp %216 : vector<8x128xf32>
    %cst_57 = arith.constant 1.000000e+00 : f32
    %218 = vector.broadcast %cst_57 : f32 to vector<8x128xf32>
    %219 = arith.addf %218, %217 : vector<8x128xf32>
    %220 = arith.divf %218, %219 : vector<8x128xf32>
    %221 = vector.extract_strided_slice %214 {offsets = [0, 128], sizes = [8, 128], strides = [1, 1]} : vector<8x512xf32> to vector<8x128xf32>
    %222 = arith.negf %221 : vector<8x128xf32>
    %223 = math.exp %222 : vector<8x128xf32>
    %cst_58 = arith.constant 1.000000e+00 : f32
    %224 = vector.broadcast %cst_58 : f32 to vector<8x128xf32>
    %225 = arith.addf %224, %223 : vector<8x128xf32>
    %226 = arith.divf %224, %225 : vector<8x128xf32>
    %227 = vector.extract_strided_slice %214 {offsets = [0, 256], sizes = [8, 128], strides = [1, 1]} : vector<8x512xf32> to vector<8x128xf32>
    %228 = math.tanh %227 : vector<8x128xf32>
    %229 = vector.extract_strided_slice %214 {offsets = [0, 384], sizes = [8, 128], strides = [1, 1]} : vector<8x512xf32> to vector<8x128xf32>
    %230 = arith.negf %229 : vector<8x128xf32>
    %231 = math.exp %230 : vector<8x128xf32>
    %cst_59 = arith.constant 1.000000e+00 : f32
    %232 = vector.broadcast %cst_59 : f32 to vector<8x128xf32>
    %233 = arith.addf %232, %231 : vector<8x128xf32>
    %234 = arith.divf %232, %233 : vector<8x128xf32>
    %235 = arith.mulf %226, %203 : vector<8x128xf32>
    %236 = arith.mulf %220, %228 : vector<8x128xf32>
    %237 = arith.addf %235, %236 : vector<8x128xf32>
    %238 = math.tanh %237 : vector<8x128xf32>
    %239 = arith.mulf %234, %238 : vector<8x128xf32>
    %240 = arith.index_cast %c6_i32 : i32 to index
    %c0_60 = arith.constant 0 : index
    %c0_61 = arith.constant 0 : index
    %241 = vector.load %arg3[%240, %c0_60, %c0_61] : memref<8x8x128xf32, #tpu.memory_space<vmem>>, vector<1x8x128xf32>
    %242 = vector.shape_cast %241 : vector<1x8x128xf32> to vector<8x128xf32>
    %243 = vector.shape_cast %239 : vector<8x128xf32> to vector<1x8x128xf32>
    tpu.vector_store %arg3[%240, %c0_60, %c0_61], %243 {strides = array<i32>} : memref<8x8x128xf32, #tpu.memory_space<vmem>>, vector<1x8x128xf32>,
    %c7_i32 = arith.constant 7 : i32
    %244 = arith.index_cast %c7_i32 : i32 to index
    %c0_62 = arith.constant 0 : index
    %c0_63 = arith.constant 0 : index
    %245 = vector.load %arg1[%244, %c0_62, %c0_63] : memref<8x8x512xf32, #tpu.memory_space<vmem>>, vector<1x8x512xf32>
    %246 = vector.shape_cast %245 : vector<1x8x512xf32> to vector<8x512xf32>
    %cst_64 = arith.constant dense<0.000000e+00> : vector<8x512xf32>
    %247 = tpu.matmul %239, %3, %cst_64 {dimension_numbers = #tpu.dot_dimension_numbers<[1], [0], [0], [1], [0, 0, 1, 1], [], []>} : vector<8x128xf32>, vector<128x512xf32>, vector<8x512xf32> -> vector<8x512xf32>
    %248 = arith.addf %246, %247 : vector<8x512xf32>
    %249 = vector.extract_strided_slice %248 {offsets = [0, 0], sizes = [8, 128], strides = [1, 1]} : vector<8x512xf32> to vector<8x128xf32>
    %250 = arith.negf %249 : vector<8x128xf32>
    %251 = math.exp %250 : vector<8x128xf32>
    %cst_65 = arith.constant 1.000000e+00 : f32
    %252 = vector.broadcast %cst_65 : f32 to vector<8x128xf32>
    %253 = arith.addf %252, %251 : vector<8x128xf32>
    %254 = arith.divf %252, %253 : vector<8x128xf32>
    %255 = vector.extract_strided_slice %248 {offsets = [0, 128], sizes = [8, 128], strides = [1, 1]} : vector<8x512xf32> to vector<8x128xf32>
    %256 = arith.negf %255 : vector<8x128xf32>
    %257 = math.exp %256 : vector<8x128xf32>
    %cst_66 = arith.constant 1.000000e+00 : f32
    %258 = vector.broadcast %cst_66 : f32 to vector<8x128xf32>
    %259 = arith.addf %258, %257 : vector<8x128xf32>
    %260 = arith.divf %258, %259 : vector<8x128xf32>
    %261 = vector.extract_strided_slice %248 {offsets = [0, 256], sizes = [8, 128], strides = [1, 1]} : vector<8x512xf32> to vector<8x128xf32>
    %262 = math.tanh %261 : vector<8x128xf32>
    %263 = vector.extract_strided_slice %248 {offsets = [0, 384], sizes = [8, 128], strides = [1, 1]} : vector<8x512xf32> to vector<8x128xf32>
    %264 = arith.negf %263 : vector<8x128xf32>
    %265 = math.exp %264 : vector<8x128xf32>
    %cst_67 = arith.constant 1.000000e+00 : f32
    %266 = vector.broadcast %cst_67 : f32 to vector<8x128xf32>
    %267 = arith.addf %266, %265 : vector<8x128xf32>
    %268 = arith.divf %266, %267 : vector<8x128xf32>
    %269 = arith.mulf %260, %237 : vector<8x128xf32>
    %270 = arith.mulf %254, %262 : vector<8x128xf32>
    %271 = arith.addf %269, %270 : vector<8x128xf32>
    %272 = math.tanh %271 : vector<8x128xf32>
    %273 = arith.mulf %268, %272 : vector<8x128xf32>
    %274 = arith.index_cast %c7_i32 : i32 to index
    %c0_68 = arith.constant 0 : index
    %c0_69 = arith.constant 0 : index
    %275 = vector.load %arg3[%274, %c0_68, %c0_69] : memref<8x8x128xf32, #tpu.memory_space<vmem>>, vector<1x8x128xf32>
    %276 = vector.shape_cast %275 : vector<1x8x128xf32> to vector<8x128xf32>
    %277 = vector.shape_cast %273 : vector<8x128xf32> to vector<1x8x128xf32>
    tpu.vector_store %arg3[%274, %c0_68, %c0_69], %277 {strides = array<i32>} : memref<8x8x128xf32, #tpu.memory_space<vmem>>, vector<1x8x128xf32>,
    %c8_i32 = arith.constant 8 : i32
    %c0_70 = arith.constant 0 : index
    %c0_71 = arith.constant 0 : index
    %278 = vector.load %arg5[%c0_70, %c0_71] : memref<8x128xf32, #tpu.memory_space<vmem>>, vector<8x128xf32>
    tpu.vector_store %arg5[%c0_70, %c0_71], %273 {strides = array<i32>} : memref<8x128xf32, #tpu.memory_space<vmem>>, vector<8x128xf32>,
    %c0_72 = arith.constant 0 : index
    %c0_73 = arith.constant 0 : index
    %279 = vector.load %arg6[%c0_72, %c0_73] : memref<8x128xf32, #tpu.memory_space<vmem>>, vector<8x128xf32>
    tpu.vector_store %arg6[%c0_72, %c0_73], %271 {strides = array<i32>} : memref<8x128xf32, #tpu.memory_space<vmem>>, vector<8x128xf32>,
    %c0_74 = arith.constant 0 : index
    %c0_75 = arith.constant 0 : index
    %280 = vector.load %arg4[%c0_74, %c0_75] : memref<8x128xf32, #tpu.memory_space<vmem>>, vector<8x128xf32>
    tpu.vector_store %arg4[%c0_74, %c0_75], %271 {strides = array<i32>} : memref<8x128xf32, #tpu.memory_space<vmem>>, vector<8x128xf32>,
    return
  }
  func.func @transform_0(%arg0: i32) -> (i32, i32, i32) {
    %c0_i32 = arith.constant 0 : i32
    %c0_i32_0 = arith.constant 0 : i32
    %c0_i32_1 = arith.constant 0 : i32
    return %arg0, %c0_i32, %c0_i32_0 : i32, i32, i32
  }
  func.func @transform_1(%arg0: i32) -> (i32, i32) {
    %c0_i32 = arith.constant 0 : i32
    %c0_i32_0 = arith.constant 0 : i32
    %c0_i32_1 = arith.constant 0 : i32
    return %c0_i32, %c0_i32_0 : i32, i32
  }
  func.func @transform_2(%arg0: i32) -> (i32, i32, i32) {
    %c0_i32 = arith.constant 0 : i32
    %c0_i32_0 = arith.constant 0 : i32
    %c0_i32_1 = arith.constant 0 : i32
    return %arg0, %c0_i32, %c0_i32_0 : i32, i32, i32
  }
  func.func @transform_3(%arg0: i32) -> (i32, i32) {
    %c0_i32 = arith.constant 0 : i32
    %c0_i32_0 = arith.constant 0 : i32
    %c0_i32_1 = arith.constant 0 : i32
    return %c0_i32, %c0_i32_0 : i32, i32
  }
}

</mosaic_0001>

<bundles_post_ra>
// kernel: encoder_forward.2
= control target key start
LH: loop header
LB: loop body
LE: loop exit
PB: predicated region body
PF: predicated region fallthrough
CT: control target
= control target key end

     0   :  { %v3106_v3 = vmov 0.0   ;;  %s3100_s1 = inlined_call_operand.vmem [shape: f32[128,512], index: 1, kind: input, shape index: {}]   ;;  %s3101_s0 = inlined_call_operand.vmem [shape: f32[8,8,512], index: 0, kind: input, shape index: {}]   ;;  %s3102_s2 = inlined_call_operand.vmem [shape: f32[8,8,128], index: 2, kind: output, shape index: {0}]   ;;  %s3103_s3 = inlined_call_operand.vmem [shape: f32[8,128], index: 3, kind: output, shape index: {1}]  }
   0x1   :  { %v1786_v0 = vld [vmem:[%s3100_s1 + $0x1e8] sm:$0xff]  ;;  %v1791_v1 = vld [vmem:[%s3100_s1 + $0x1e0] sm:$0xff]  ;;  %153 = vmatprep.mubr.f32.mxu0 %v3106_v3  ;;  %224 = vmatprep.mubr.f32.mxu1 %v3106_v3  ;;  %v1833_v9 = vld [vmem:[%s3100_s1 + $0x1f8] sm:$0xff] }
   0x2   :  { %3173 = vst [vmem:[#allocation4_spill] sm:$0xff] %v1786_v0  ;;  %v1796_v2 = vld [vmem:[%s3100_s1 + $0x1c8] sm:$0xff]  ;;  %89 = vmatprep.subr.mxu0 %v1786_v0  ;;  %v1804_v4 = vld [vmem:[%s3100_s1 + $0x1c0] sm:$0xff]  ;;  %3174 = vst [vmem:[#allocation5_spill] sm:$0xff] %v1833_v9  ;;  %160 = vmatprep.subr.mxu1 %v1833_v9 }
   0x3   :  { %90 = vmatpush1.msra.mxu0 %v1791_v1  ;;  %v1810_v5 = vld [vmem:[%s3100_s1 + $0x1a8] sm:$0xff]  ;;  %v1816_v6 = vld [vmem:[%s3100_s1 + $0x1a0] sm:$0xff]  ;;  %v1845_v11 = vld [vmem:[%s3100_s1 + $0x1f0] sm:$0xff] }
   0x4   :  { %91 = vmatprep.subr.mxu0 %v1796_v2  ;;  %v1822_v7 = vld [vmem:[%s3100_s1 + $0x188] sm:$0xff]  ;;  %v1828_v8 = vld [vmem:[%s3100_s1 + $0x180] sm:$0xff]  ;;  %161 = vmatpush1.msra.mxu1 %v1845_v11  ;;  %v1857_v13 = vld [vmem:[%s3100_s1 + $0x1d8] sm:$0xff] }
   0x5   :  { %92 = vmatpush1.msra.mxu0 %v1804_v4  ;;  %v1839_v10 = vld [vmem:[%s3100_s1 + $0x168] sm:$0xff]  ;;  %v1851_v12 = vld [vmem:[%s3100_s1 + $0x160] sm:$0xff]  ;;  %v1862_v14 = vld [vmem:[%s3100_s1 + $0x1d0] sm:$0xff]  ;;  %162 = vmatprep.subr.mxu1 %v1857_v13 }
   0x6   :  { %93 = vmatprep.subr.mxu0 %v1810_v5  ;;  %v1868_v15 = vld [vmem:[%s3100_s1 + $0x148] sm:$0xff]  ;;  %v1874_v16 = vld [vmem:[%s3100_s1 + $0x1b8] sm:$0xff]  ;;  %v1880_v17 = vld [vmem:[%s3100_s1 + $0x140] sm:$0xff]  ;;  %163 = vmatpush1.msra.mxu1 %v1862_v14 }
   0x7   :  { %94 = vmatpush1.msra.mxu0 %v1816_v6  ;;  %v1886_v18 = vld [vmem:[%s3100_s1 + $0x1b0] sm:$0xff]  ;;  %v1891_v19 = vld [vmem:[%s3100_s1 + $0x198] sm:$0xff]  ;;  %v1897_v20 = vld [vmem:[%s3100_s1 + $0x128] sm:$0xff]  ;;  %164 = vmatprep.subr.mxu1 %v1874_v16 }
   0x8   :  { %95 = vmatprep.subr.mxu0 %v1822_v7  ;;  %v1903_v21 = vld [vmem:[%s3100_s1 + $0x190] sm:$0xff]  ;;  %v1909_v22 = vld [vmem:[%s3100_s1 + $0x120] sm:$0xff]  ;;  %165 = vmatpush1.msra.mxu1 %v1886_v18  ;;  %v1915_v23 = vld [vmem:[%s3100_s1 + $0x178] sm:$0xff] }
   0x9   :  { %96 = vmatpush1.msra.mxu0 %v1828_v8  ;;  %v1921_v24 = vld [vmem:[%s3100_s1 + $0x108] sm:$0xff]  ;;  %166 = vmatprep.subr.mxu1 %v1891_v19  ;;  %v1927_v25 = vld [vmem:[%s3100_s1 + $0x170] sm:$0xff]  ;;  %v1933_v26 = vld [vmem:[%s3100_s1 + $0x100] sm:$0xff] }
   0xa   :  { %97 = vmatprep.subr.mxu0 %v1839_v10  ;;  %167 = vmatpush1.msra.mxu1 %v1903_v21  ;;  %v1939_v27 = vld [vmem:[%s3100_s1 + $0x158] sm:$0xff]  ;;  %v1945_v28 = vld [vmem:[%s3100_s1 + $0xe8] sm:$0xff]  ;;  %v1951_v29 = vld [vmem:[%s3100_s1 + $0x150] sm:$0xff] }
   0xb   :  { %98 = vmatpush1.msra.mxu0 %v1851_v12  ;;  %168 = vmatprep.subr.mxu1 %v1915_v23  ;;  %v1957_v30 = vld [vmem:[%s3100_s1 + $0xe0] sm:$0xff]  ;;  %v1963_v31 = vld [vmem:[%s3100_s1 + $0x138] sm:$0xff]  ;;  %v1969_v32 = vld [vmem:[%s3100_s1 + $0xc8] sm:$0xff] }
   0xc   :  { %99 = vmatprep.subr.mxu0 %v1868_v15  ;;  %169 = vmatpush1.msra.mxu1 %v1927_v25  ;;  %v1975_v33 = vld [vmem:[%s3100_s1 + $0x130] sm:$0xff]  ;;  %v1981_v34 = vld [vmem:[%s3100_s1 + $0xc0] sm:$0xff]  ;;  %v1987_v35 = vld [vmem:[%s3100_s1 + $0x118] sm:$0xff] }
   0xd   :  { %100 = vmatpush1.msra.mxu0 %v1880_v17  ;;  %170 = vmatprep.subr.mxu1 %v1939_v27  ;;  %v1993_v36 = vld [vmem:[%s3100_s1 + $0xa8] sm:$0xff]  ;;  %v1999_v37 = vld [vmem:[%s3100_s1 + $0x110] sm:$0xff]  ;;  %v2005_v38 = vld [vmem:[%s3100_s1 + $0xa0] sm:$0xff] }
   0xe   :  { %101 = vmatprep.subr.mxu0 %v1897_v20  ;;  %171 = vmatpush1.msra.mxu1 %v1951_v29  ;;  %v2011_v39 = vld [vmem:[%s3100_s1 + $0xf8] sm:$0xff]  ;;  %v2017_v40 = vld [vmem:[%s3100_s1 + $0x88] sm:$0xff]  ;;  %v2023_v41 = vld [vmem:[%s3100_s1 + $0xf0] sm:$0xff] }
   0xf   :  { %102 = vmatpush1.msra.mxu0 %v1909_v22  ;;  %172 = vmatprep.subr.mxu1 %v1963_v31  ;;  %v2029_v42 = vld [vmem:[%s3100_s1 + $0x80] sm:$0xff]  ;;  %v2035_v43 = vld [vmem:[%s3100_s1 + $0xd8] sm:$0xff]  ;;  %v2041_v44 = vld [vmem:[%s3100_s1 + $0x68] sm:$0xff] }
  0x10   :  { %103 = vmatprep.subr.mxu0 %v1921_v24  ;;  %173 = vmatpush1.msra.mxu1 %v1975_v33  ;;  %3175 = vst [vmem:[#allocation6_spill] sm:$0xff] %v2041_v44  ;;  %v2047_v45 = vld [vmem:[%s3100_s1 + $0xd0] sm:$0xff]  ;;  %v2053_v46 = vld [vmem:[%s3100_s1 + $0x60] sm:$0xff]  ;;  %v2059_v47 = vld [vmem:[%s3100_s1 + $0xb8] sm:$0xff] }
  0x11   :  { %104 = vmatpush1.msra.mxu0 %v1933_v26  ;;  %174 = vmatprep.subr.mxu1 %v1987_v35  ;;  %3176 = vst [vmem:[#allocation7_spill] sm:$0xff] %v2053_v46  ;;  %v2065_v48 = vld [vmem:[%s3100_s1 + $0x48] sm:$0xff]  ;;  %v2071_v49 = vld [vmem:[%s3100_s1 + $0xb0] sm:$0xff]  ;;  %v2077_v50 = vld [vmem:[%s3100_s1 + $0x40] sm:$0xff] }
  0x12   :  { %105 = vmatprep.subr.mxu0 %v1945_v28  ;;  %175 = vmatpush1.msra.mxu1 %v1999_v37  ;;  %3177 = vst [vmem:[#allocation8_spill] sm:$0xff] %v2065_v48  ;;  %3178 = vst [vmem:[#allocation9_spill] sm:$0xff] %v2077_v50  ;;  %v2083_v51 = vld [vmem:[%s3100_s1 + $0x98] sm:$0xff]  ;;  %v2089_v52 = vld [vmem:[%s3100_s1 + $0x28] sm:$0xff] }
  0x13   :  { %106 = vmatpush1.msra.mxu0 %v1957_v30  ;;  %176 = vmatprep.subr.mxu1 %v2011_v39  ;;  %3179 = vst [vmem:[#allocation10_spill] sm:$0xff] %v2089_v52  ;;  %v2095_v53 = vld [vmem:[%s3100_s1 + $0x90] sm:$0xff]  ;;  %v2101_v54 = vld [vmem:[%s3100_s1 + $0x20] sm:$0xff]  ;;  %v2107_v55 = vld [vmem:[%s3100_s1 + $0x78] sm:$0xff] }
  0x14   :  { %107 = vmatprep.subr.mxu0 %v1969_v32  ;;  %177 = vmatpush1.msra.mxu1 %v2023_v41  ;;  %3180 = vst [vmem:[#allocation11_spill] sm:$0xff] %v2095_v53  ;;  %3181 = vst [vmem:[#allocation12_spill] sm:$0xff] %v2101_v54  ;;  %v2113_v56 = vld [vmem:[%s3100_s1 + $0x8] sm:$0xff]  ;;  %v2119_v57 = vld [vmem:[%s3100_s1 + $0x70] sm:$0xff] }
  0x15   :  { %108 = vmatpush1.msra.mxu0 %v1981_v34  ;;  %178 = vmatprep.subr.mxu1 %v2035_v43  ;;  %3182 = vst [vmem:[#allocation13_spill] sm:$0xff] %v2107_v55  ;;  %3183 = vst [vmem:[#allocation14_spill] sm:$0xff] %v2113_v56  ;;  %v2125_v58 = vld [vmem:[%s3100_s1] sm:$0xff]  ;;  %v2131_v59 = vld [vmem:[%s3100_s1 + $0x58] sm:$0xff] }
  0x16   :  { %109 = vmatprep.subr.mxu0 %v1993_v36  ;;  %179 = vmatpush1.msra.mxu1 %v2047_v45  ;;  %3184 = vst [vmem:[#allocation15_spill] sm:$0xff] %v2119_v57  ;;  %3185 = vst [vmem:[#allocation16_spill] sm:$0xff] %v2125_v58  ;;  %v2138_v60 = vld [vmem:[%s3100_s1 + $0x50] sm:$0xff]  ;;  %v2145_v61 = vld [vmem:[%s3100_s1 + $0x38] sm:$0xff] }
  0x17   :  { %110 = vmatpush1.msra.mxu0 %v2005_v38  ;;  %180 = vmatprep.subr.mxu1 %v2059_v47  ;;  %3186 = vst [vmem:[#allocation17_spill] sm:$0xff] %v2131_v59  ;;  %3187 = vst [vmem:[#allocation18_spill] sm:$0xff] %v2138_v60  ;;  %v2152_v62 = vld [vmem:[%s3100_s1 + $0x30] sm:$0xff]  ;;  %v2159_v63 = vld [vmem:[%s3100_s1 + $0x18] sm:$0xff] }
  0x18   :  { %111 = vmatprep.subr.mxu0 %v2017_v40  ;;  %181 = vmatpush1.msra.mxu1 %v2071_v49  ;;  %3188 = vst [vmem:[#allocation19_spill] sm:$0xff] %v2145_v61  ;;  %3189 = vst [vmem:[#allocation20_spill] sm:$0xff] %v2152_v62 }
  0x19   :  { %112 = vmatpush1.msra.mxu0 %v2029_v42  ;;  %182 = vmatprep.subr.mxu1 %v2083_v51  ;;  %3190 = vst [vmem:[#allocation21_spill] sm:$0xff] %v2159_v63 }
  0x1a   :  { %113 = vmatprep.subr.mxu0 %v2041_v44  ;;  %183 = vmatpush1.msra.mxu1 %v2095_v53 }
  0x1b   :  { %114 = vmatpush1.msra.mxu0 %v2053_v46  ;;  %184 = vmatprep.subr.mxu1 %v2107_v55 }
  0x1c   :  { %115 = vmatprep.subr.mxu0 %v2065_v48  ;;  %185 = vmatpush1.msra.mxu1 %v2119_v57 }
  0x1d   :  { %116 = vmatpush1.msra.mxu0 %v2077_v50  ;;  %186 = vmatprep.subr.mxu1 %v2131_v59 }
  0x1e   :  { %117 = vmatprep.subr.mxu0 %v2089_v52  ;;  %187 = vmatpush1.msra.mxu1 %v2138_v60 }
  0x1f   :  { %118 = vmatpush1.msra.mxu0 %v2101_v54  ;;  %188 = vmatprep.subr.mxu1 %v2145_v61 }
  0x20   :  { %119 = vmatprep.subr.mxu0 %v2113_v56  ;;  %189 = vmatpush1.msra.mxu1 %v2152_v62 }
  0x21   :  { %120 = vmatpush1.msra.mxu0 %v2125_v58  ;;  %v2165_v58 = vld [vmem:[%s3100_s1 + $0x10] sm:$0xff]  ;;  %190 = vmatprep.subr.mxu1 %v2159_v63 }
  0x22   :  { %154 = vmatmul.mubr.f32.vlgmr.msra.gmra.mxu0 %v3106_v3  ;;  %3191 = vst [vmem:[#allocation22_spill] sm:$0xff] %v2165_v58  ;;  %265 = vmatprep.subr.mxu0 %v1786_v0 }
  0x23   :  { %266 = vmatpush1.msra.mxu0 %v1791_v1  ;;  %191 = vmatpush1.msra.mxu1 %v2165_v58 }
  0x24   :  { %267 = vmatprep.subr.mxu0 %v1796_v2  ;;  %225 = vmatmul.mubr.f32.vlgmr.msra.gmra.mxu1 %v3106_v3  ;;  %v3192_v3 = vld [vmem:[#allocation16_spill] sm:$0xff] }
  0x25   :  { %268 = vmatpush1.msra.mxu0 %v1804_v4  ;;  %336 = vmatprep.subr.mxu1 %v1833_v9 }
  0x26   :  { %337 = vmatpush1.msra.mxu1 %v1845_v11  ;;  %269 = vmatprep.subr.mxu0 %v1810_v5 }
  0x27   :  { %338 = vmatprep.subr.mxu1 %v1857_v13  ;;  %270 = vmatpush1.msra.mxu0 %v1816_v6 }
  0x28   :  { %339 = vmatpush1.msra.mxu1 %v1862_v14  ;;  %271 = vmatprep.subr.mxu0 %v1822_v7 }
  0x29   :  { %340 = vmatprep.subr.mxu1 %v1874_v16  ;;  %272 = vmatpush1.msra.mxu0 %v1828_v8 }
  0x2a   :  { %341 = vmatpush1.msra.mxu1 %v1886_v18  ;;  %273 = vmatprep.subr.mxu0 %v1839_v10 }
  0x2b   :  { %342 = vmatprep.subr.mxu1 %v1891_v19  ;;  %274 = vmatpush1.msra.mxu0 %v1851_v12 }
  0x2c   :  { %343 = vmatpush1.msra.mxu1 %v1903_v21  ;;  %275 = vmatprep.subr.mxu0 %v1868_v15 }
  0x2d   :  { %344 = vmatprep.subr.mxu1 %v1915_v23  ;;  %276 = vmatpush1.msra.mxu0 %v1880_v17 }
  0x2e   :  { %345 = vmatpush1.msra.mxu1 %v1927_v25  ;;  %277 = vmatprep.subr.mxu0 %v1897_v20 }
  0x2f   :  { %346 = vmatprep.subr.mxu1 %v1939_v27  ;;  %278 = vmatpush1.msra.mxu0 %v1909_v22 }
  0x30   :  { %347 = vmatpush1.msra.mxu1 %v1951_v29  ;;  %279 = vmatprep.subr.mxu0 %v1921_v24 }
  0x31   :  { %348 = vmatprep.subr.mxu1 %v1963_v31  ;;  %280 = vmatpush1.msra.mxu0 %v1933_v26 }
  0x32   :  { %349 = vmatpush1.msra.mxu1 %v1975_v33  ;;  %281 = vmatprep.subr.mxu0 %v1945_v28 }
  0x33   :  { %350 = vmatprep.subr.mxu1 %v1987_v35  ;;  %282 = vmatpush1.msra.mxu0 %v1957_v30 }
  0x34   :  { %351 = vmatpush1.msra.mxu1 %v1999_v37  ;;  %283 = vmatprep.subr.mxu0 %v1969_v32 }
  0x35   :  { %352 = vmatprep.subr.mxu1 %v2011_v39  ;;  %284 = vmatpush1.msra.mxu0 %v1981_v34 }
  0x36   :  { %353 = vmatpush1.msra.mxu1 %v2023_v41  ;;  %285 = vmatprep.subr.mxu0 %v1993_v36 }
  0x37   :  { %354 = vmatprep.subr.mxu1 %v2035_v43  ;;  %286 = vmatpush1.msra.mxu0 %v2005_v38 }
  0x38   :  { %355 = vmatpush1.msra.mxu1 %v2047_v45  ;;  %287 = vmatprep.subr.mxu0 %v2017_v40 }
  0x39   :  { %356 = vmatprep.subr.mxu1 %v2059_v47  ;;  %288 = vmatpush1.msra.mxu0 %v2029_v42 }
  0x3a   :  { %357 = vmatpush1.msra.mxu1 %v2071_v49  ;;  %289 = vmatprep.subr.mxu0 %v2041_v44 }
  0x3b   :  { %358 = vmatprep.subr.mxu1 %v2083_v51  ;;  %290 = vmatpush1.msra.mxu0 %v2053_v46 }
  0x3c   :  { %359 = vmatpush1.msra.mxu1 %v2095_v53  ;;  %291 = vmatprep.subr.mxu0 %v2065_v48  ;;  %v3193_v48 = vmov 0.0  }
  0x3d   :  { %360 = vmatprep.subr.mxu1 %v2107_v55  ;;  %292 = vmatpush1.msra.mxu0 %v2077_v50 }
  0x3e   :  { %361 = vmatpush1.msra.mxu1 %v2119_v57  ;;  %293 = vmatprep.subr.mxu0 %v2089_v52 }
  0x3f   :  { %362 = vmatprep.subr.mxu1 %v2131_v59  ;;  %294 = vmatpush1.msra.mxu0 %v2101_v54 }
  0x40   :  { %363 = vmatpush1.msra.mxu1 %v2138_v60  ;;  %295 = vmatprep.subr.mxu0 %v2113_v56  ;;  %v85_v56 = vld [vmem:[%s3101_s0] sm:$0xff]  ;;  %v87_v60 = vld [vmem:[%s3101_s0 + $0x10] sm:$0xff] }
  0x41   :  { %364 = vmatprep.subr.mxu1 %v2145_v61  ;;  %296 = vmatpush1.msra.mxu0 %v3192_v3  ;;  %v86_v3 = vld [vmem:[%s3101_s0 + $0x8] sm:$0xff] }
  0x42   :  { %365 = vmatpush1.msra.mxu1 %v2152_v62  ;;  %329 = vmatprep.mubr.f32.mxu0 %v3193_v48 }
  0x43   :  { %366 = vmatprep.subr.mxu1 %v2159_v63  ;;  %400 = vmatprep.mubr.f32.mxu1 %v3193_v48 }
  0x44   :  { %367 = vmatpush1.msra.mxu1 %v2165_v58  ;;  %442 = vmatprep.subr.mxu0 %v1786_v0 }
  0x45   :  { %513 = vmatprep.subr.mxu1 %v1833_v9  ;;  %v88_v9 = vld [vmem:[%s3101_s0 + $0x18] sm:$0xff] }
  0xe2   :  { %v155_v54 = vpop.f32.mrf.mxu0 }
  0xe3   :  { %v231_v62 = vadd.f32 %v155_v54, %v85_v56 }
  0xe4   :  { %v157_v61 = vpop.f32.mrf.mxu0  ;;  %v226_v58 = vpop.f32.mrf.mxu1 }
  0xe5   :  { %v1510_v63 = vmul.f32 -1.442695, %v231_v62  ;;  %v232_v52 = vadd.f32 %v157_v61, %v86_v3  ;;  %v233_v59 = vadd.f32 %v226_v58, %v87_v60  ;;  %v3198_v58 = vld [vmem:[#allocation15_spill] sm:$0xff]  ;;  %v3200_v60 = vld [vmem:[#allocation17_spill] sm:$0xff] }
  0xe6   :  { %v228_v0 = vpop.f32.mrf.mxu1 }
  0xe7   :  { %1570 = vpow2.f32 %v1510_v63  ;;  %v1511_v48 = vmul.f32 -1.442695, %v232_v52  ;;  %v234_v50 = vadd.f32 %v228_v0, %v88_v9 }
  0xe9   :  { %1572 = vpow2.f32 %v1511_v48  ;;  %v1512_v57 = vmul.f32 -1.442695, %v234_v50 }
  0xea   :  { %1574 = vtanh.f32 %v233_v59  ;;  %v3199_v59 = vld [vmem:[#allocation8_spill] sm:$0xff] }
  0xeb   :  { %1576 = vpow2.f32 %v1512_v57  ;;  %v3197_v57 = vld [vmem:[#allocation7_spill] sm:$0xff] }
  0xf4   :  { %v1571_v54 = vpop.eup %1570 }
  0xf5   :  { %v238_v56 = vadd.f32 1.0, %v1571_v54  ;;  %v3201_v54 = vld [vmem:[#allocation9_spill] sm:$0xff] }
  0xf6   :  { %v1573_v3 = vpop.eup %1572 }
  0xf7   :  { %1578 = vrcp.f32 %v238_v56  ;;  %v244_v52 = vadd.f32 1.0, %v1573_v3  ;;  %v1575_v48 = vpop.eup %1574  ;;  %v3202_v56 = vld [vmem:[#allocation18_spill] sm:$0xff] }
  0xf8   :  { %v1577_v61 = vpop.eup %1576  ;;  %v3203_v3 = vld [vmem:[#allocation10_spill] sm:$0xff] }
  0xf9   :  { %1580 = vrcp.f32 %v244_v52  ;;  %v251_v46 = vadd.f32 1.0, %v1577_v61  ;;  %v3204_v52 = vld [vmem:[#allocation19_spill] sm:$0xff]  ;;  %v3206_v61 = vld [vmem:[#allocation20_spill] sm:$0xff] }
  0xfb   :  { %1582 = vrcp.f32 %v251_v46  ;;  %v3195_v46 = vld [vmem:[#allocation6_spill] sm:$0xff] }
 0x104   :  { %v1579_v62 = vpop.eup %1578 }
 0x105   :  { %v255_v44 = vmul.f32 %v1579_v62, %v1575_v48  ;;  %v3205_v48 = vld [vmem:[#allocation12_spill] sm:$0xff]  ;;  %v3207_v62 = vld [vmem:[#allocation14_spill] sm:$0xff] }
 0x106   :  { %v1581_v63 = vpop.eup %1580 }
 0x107   :  { %v254_v55 = vmul.f32 0.0, %v1581_v63  ;;  %v3208_v63 = vld [vmem:[#allocation21_spill] sm:$0xff] }
 0x108   :  { %v1583_v0 = vpop.eup %1582 }
 0x109   :  { %v2251_v53 = vadd.f32 %v255_v44, %v254_v55  ;;  %v3194_v44 = vld [vmem:[#allocation11_spill] sm:$0xff]  ;;  %v3196_v55 = vld [vmem:[#allocation13_spill] sm:$0xff] }
 0x10b   :  { %1584 = vtanh.f32 %v2251_v53 }
 0x118   :  { %v1585_v9 = vpop.eup %1584 }
 0x119   :  { %v258_v50 = vmul.f32 %v1585_v9, %v1583_v0  ;;  %v3209_v0 = vld [vmem:[#allocation16_spill] sm:$0xff]  ;;  %v3210_v9 = vmov 0.0  }
 0x11b   :  { %259 = vst [vmem:[%s3102_s2] sm:$0xff] %v258_v50  ;;  %330 = vmatmul.mubr.f32.vlgmr.msra.gmra.mxu0 %v258_v50  ;;  %401 = vmatmul.mubr.f32.vlgmr.msra.gmra.mxu1 %v258_v50  ;;  %v3211_v50 = vld [vmem:[#allocation22_spill] sm:$0xff] }
 0x11c   :  { %443 = vmatpush1.msra.mxu0 %v1791_v1  ;;  %514 = vmatpush1.msra.mxu1 %v1845_v11 }
 0x11d   :  { %444 = vmatprep.subr.mxu0 %v1796_v2  ;;  %515 = vmatprep.subr.mxu1 %v1857_v13 }
 0x11e   :  { %445 = vmatpush1.msra.mxu0 %v1804_v4  ;;  %516 = vmatpush1.msra.mxu1 %v1862_v14 }
 0x11f   :  { %446 = vmatprep.subr.mxu0 %v1810_v5  ;;  %517 = vmatprep.subr.mxu1 %v1874_v16 }
 0x120   :  { %447 = vmatpush1.msra.mxu0 %v1816_v6  ;;  %518 = vmatpush1.msra.mxu1 %v1886_v18 }
 0x121   :  { %448 = vmatprep.subr.mxu0 %v1822_v7  ;;  %519 = vmatprep.subr.mxu1 %v1891_v19 }
 0x122   :  { %449 = vmatpush1.msra.mxu0 %v1828_v8  ;;  %520 = vmatpush1.msra.mxu1 %v1903_v21 }
 0x123   :  { %450 = vmatprep.subr.mxu0 %v1839_v10  ;;  %521 = vmatprep.subr.mxu1 %v1915_v23 }
 0x124   :  { %451 = vmatpush1.msra.mxu0 %v1851_v12  ;;  %522 = vmatpush1.msra.mxu1 %v1927_v25 }
 0x125   :  { %452 = vmatprep.subr.mxu0 %v1868_v15  ;;  %523 = vmatprep.subr.mxu1 %v1939_v27 }
 0x126   :  { %453 = vmatpush1.msra.mxu0 %v1880_v17  ;;  %524 = vmatpush1.msra.mxu1 %v1951_v29 }
 0x127   :  { %454 = vmatprep.subr.mxu0 %v1897_v20  ;;  %525 = vmatprep.subr.mxu1 %v1963_v31 }
 0x128   :  { %455 = vmatpush1.msra.mxu0 %v1909_v22  ;;  %526 = vmatpush1.msra.mxu1 %v1975_v33 }
 0x129   :  { %456 = vmatprep.subr.mxu0 %v1921_v24  ;;  %527 = vmatprep.subr.mxu1 %v1987_v35 }
 0x12a   :  { %457 = vmatpush1.msra.mxu0 %v1933_v26  ;;  %528 = vmatpush1.msra.mxu1 %v1999_v37 }
 0x12b   :  { %458 = vmatprep.subr.mxu0 %v1945_v28  ;;  %529 = vmatprep.subr.mxu1 %v2011_v39 }
 0x12c   :  { %459 = vmatpush1.msra.mxu0 %v1957_v30  ;;  %530 = vmatpush1.msra.mxu1 %v2023_v41 }
 0x12d   :  { %460 = vmatprep.subr.mxu0 %v1969_v32  ;;  %531 = vmatprep.subr.mxu1 %v2035_v43 }
 0x12e   :  { %461 = vmatpush1.msra.mxu0 %v1981_v34  ;;  %532 = vmatpush1.msra.mxu1 %v2047_v45 }
 0x12f   :  { %462 = vmatprep.subr.mxu0 %v1993_v36  ;;  %533 = vmatprep.subr.mxu1 %v2059_v47 }
 0x130   :  { %463 = vmatpush1.msra.mxu0 %v2005_v38  ;;  %534 = vmatpush1.msra.mxu1 %v2071_v49 }
 0x131   :  { %464 = vmatprep.subr.mxu0 %v2017_v40  ;;  %535 = vmatprep.subr.mxu1 %v2083_v51 }
 0x132   :  { %465 = vmatpush1.msra.mxu0 %v2029_v42  ;;  %536 = vmatpush1.msra.mxu1 %v3194_v44 }
 0x133   :  { %466 = vmatprep.subr.mxu0 %v3195_v46  ;;  %537 = vmatprep.subr.mxu1 %v3196_v55 }
 0x134   :  { %467 = vmatpush1.msra.mxu0 %v3197_v57  ;;  %538 = vmatpush1.msra.mxu1 %v3198_v58 }
 0x135   :  { %468 = vmatprep.subr.mxu0 %v3199_v59  ;;  %539 = vmatprep.subr.mxu1 %v3200_v60  ;;  %v1515_v59 = vld [vmem:[%s3101_s0 + $0x30] sm:$0xff] }
 0x136   :  { %469 = vmatpush1.msra.mxu0 %v3201_v54  ;;  %540 = vmatpush1.msra.mxu1 %v3202_v56  ;;  %v3212_v56 = vld [vmem:[#allocation4_spill] sm:$0xff] }
 0x137   :  { %470 = vmatprep.subr.mxu0 %v3203_v3  ;;  %541 = vmatprep.subr.mxu1 %v3204_v52  ;;  %v3213_v3 = vld [vmem:[#allocation5_spill] sm:$0xff] }
 0x138   :  { %471 = vmatpush1.msra.mxu0 %v3205_v48  ;;  %542 = vmatpush1.msra.mxu1 %v3206_v61  ;;  %v1513_v61 = vld [vmem:[%s3101_s0 + $0x20] sm:$0xff] }
 0x139   :  { %472 = vmatprep.subr.mxu0 %v3207_v62  ;;  %543 = vmatprep.subr.mxu1 %v3208_v63  ;;  %v1514_v63 = vld [vmem:[%s3101_s0 + $0x28] sm:$0xff] }
 0x13a   :  { %473 = vmatpush1.msra.mxu0 %v3209_v0  ;;  %506 = vmatprep.mubr.f32.mxu0 %v3210_v9 }
 0x13b   :  { %544 = vmatpush1.msra.mxu1 %v3211_v50  ;;  %577 = vmatprep.mubr.f32.mxu1 %v3210_v9 }
 0x13c   :  { %619 = vmatprep.subr.mxu0 %v3212_v56  ;;  %690 = vmatprep.subr.mxu1 %v3213_v3  ;;  %v1516_v3 = vld [vmem:[%s3101_s0 + $0x38] sm:$0xff] }
 0x1db   :  { %v331_v48 = vpop.f32.mrf.mxu0  ;;  %v402_v50 = vpop.f32.mrf.mxu1 }
 0x1dc   :  { %v407_v0 = vadd.f32 %v1513_v61, %v331_v48  ;;  %v409_v48 = vadd.f32 %v1515_v59, %v402_v50  ;;  %v3217_v50 = vld [vmem:[#allocation15_spill] sm:$0xff] }
 0x1dd   :  { %v333_v62 = vpop.f32.mrf.mxu0  ;;  %v404_v56 = vpop.f32.mrf.mxu1 }
 0x1de   :  { %v1517_v52 = vmul.f32 -1.442695, %v407_v0  ;;  %v408_v54 = vadd.f32 %v1514_v63, %v333_v62  ;;  %v410_v60 = vadd.f32 %v1516_v3, %v404_v56 }
 0x1e0   :  { %1586 = vpow2.f32 %v1517_v52  ;;  %v1518_v9 = vmul.f32 -1.442695, %v408_v54  ;;  %v1519_v58 = vmul.f32 -1.442695, %v410_v60  ;;  %v3216_v60 = vld [vmem:[#allocation7_spill] sm:$0xff] }
 0x1e2   :  { %1588 = vpow2.f32 %v1518_v9 }
 0x1e3   :  { %1590 = vpow2.f32 %v1519_v58 }
 0x1ed   :  { %v1587_v57 = vpop.eup %1586 }
 0x1ee   :  { %v414_v61 = vadd.f32 1.0, %v1587_v57 }
 0x1ef   :  { %v1589_v0 = vpop.eup %1588 }
 0x1f0   :  { %1592 = vrcp.f32 %v414_v61  ;;  %v420_v52 = vadd.f32 1.0, %v1589_v0  ;;  %v1591_v54 = vpop.eup %1590  ;;  %v3219_v61 = vld [vmem:[#allocation17_spill] sm:$0xff] }
 0x1f1   :  { %1594 = vtanh.f32 %v409_v48  ;;  %v427_v55 = vadd.f32 1.0, %v1591_v54  ;;  %v3218_v48 = vld [vmem:[#allocation8_spill] sm:$0xff]  ;;  %v3220_v0 = vld [vmem:[#allocation9_spill] sm:$0xff]  ;;  %v3222_v54 = vld [vmem:[#allocation10_spill] sm:$0xff] }
 0x1f2   :  { %1596 = vrcp.f32 %v420_v52  ;;  %v3221_v52 = vld [vmem:[#allocation18_spill] sm:$0xff] }
 0x1f3   :  { %1598 = vrcp.f32 %v427_v55  ;;  %v3215_v55 = vld [vmem:[#allocation13_spill] sm:$0xff] }
 0x1fd   :  { %v1593_v62 = vpop.eup %1592 }
 0x1fe   :  { %v1595_v63 = vpop.eup %1594 }
 0x1ff   :  { %v1597_v9 = vpop.eup %1596  ;;  %v431_v56 = vmul.f32 %v1595_v63, %v1593_v62  ;;  %v3223_v62 = vld [vmem:[#allocation19_spill] sm:$0xff]  ;;  %v3224_v63 = vld [vmem:[#allocation12_spill] sm:$0xff] }
 0x200   :  { %v430_v3 = vmul.f32 %v1597_v9, %v2251_v53  ;;  %v1599_v57 = vpop.eup %1598  ;;  %v3214_v53 = vld [vmem:[#allocation6_spill] sm:$0xff]  ;;  %v3225_v9 = vld [vmem:[#allocation20_spill] sm:$0xff] }
 0x202   :  { %v2336_v46 = vadd.f32 %v431_v56, %v430_v3  ;;  %v3226_v56 = vld [vmem:[#allocation14_spill] sm:$0xff]  ;;  %v3227_v3 = vld [vmem:[#allocation21_spill] sm:$0xff] }
 0x204   :  { %1600 = vtanh.f32 %v2336_v46 }
 0x211   :  { %v1601_v59 = vpop.eup %1600 }
 0x212   :  { %v434_v58 = vmul.f32 %v1601_v59, %v1599_v57  ;;  %v3228_v57 = vld [vmem:[#allocation16_spill] sm:$0xff]  ;;  %v3229_v59 = vmov 0.0  }
 0x214   :  { %1520 = vst [vmem:[%s3102_s2 + $0x8] sm:$0xff] %v434_v58  ;;  %507 = vmatmul.mubr.f32.vlgmr.msra.gmra.mxu0 %v434_v58  ;;  %578 = vmatmul.mubr.f32.vlgmr.msra.gmra.mxu1 %v434_v58  ;;  %v3230_v58 = vld [vmem:[#allocation22_spill] sm:$0xff] }
 0x215   :  { %620 = vmatpush1.msra.mxu0 %v1791_v1  ;;  %691 = vmatpush1.msra.mxu1 %v1845_v11 }
 0x216   :  { %621 = vmatprep.subr.mxu0 %v1796_v2  ;;  %692 = vmatprep.subr.mxu1 %v1857_v13 }
 0x217   :  { %622 = vmatpush1.msra.mxu0 %v1804_v4  ;;  %693 = vmatpush1.msra.mxu1 %v1862_v14 }
 0x218   :  { %623 = vmatprep.subr.mxu0 %v1810_v5  ;;  %694 = vmatprep.subr.mxu1 %v1874_v16 }
 0x219   :  { %624 = vmatpush1.msra.mxu0 %v1816_v6  ;;  %695 = vmatpush1.msra.mxu1 %v1886_v18 }
 0x21a   :  { %625 = vmatprep.subr.mxu0 %v1822_v7  ;;  %696 = vmatprep.subr.mxu1 %v1891_v19 }
 0x21b   :  { %626 = vmatpush1.msra.mxu0 %v1828_v8  ;;  %697 = vmatpush1.msra.mxu1 %v1903_v21 }
 0x21c   :  { %627 = vmatprep.subr.mxu0 %v1839_v10  ;;  %698 = vmatprep.subr.mxu1 %v1915_v23 }
 0x21d   :  { %628 = vmatpush1.msra.mxu0 %v1851_v12  ;;  %699 = vmatpush1.msra.mxu1 %v1927_v25 }
 0x21e   :  { %629 = vmatprep.subr.mxu0 %v1868_v15  ;;  %700 = vmatprep.subr.mxu1 %v1939_v27 }
 0x21f   :  { %630 = vmatpush1.msra.mxu0 %v1880_v17  ;;  %701 = vmatpush1.msra.mxu1 %v1951_v29 }
 0x220   :  { %631 = vmatprep.subr.mxu0 %v1897_v20  ;;  %702 = vmatprep.subr.mxu1 %v1963_v31 }
 0x221   :  { %632 = vmatpush1.msra.mxu0 %v1909_v22  ;;  %703 = vmatpush1.msra.mxu1 %v1975_v33 }
 0x222   :  { %633 = vmatprep.subr.mxu0 %v1921_v24  ;;  %704 = vmatprep.subr.mxu1 %v1987_v35 }
 0x223   :  { %634 = vmatpush1.msra.mxu0 %v1933_v26  ;;  %705 = vmatpush1.msra.mxu1 %v1999_v37 }
 0x224   :  { %635 = vmatprep.subr.mxu0 %v1945_v28  ;;  %706 = vmatprep.subr.mxu1 %v2011_v39 }
 0x225   :  { %636 = vmatpush1.msra.mxu0 %v1957_v30  ;;  %707 = vmatpush1.msra.mxu1 %v2023_v41 }
 0x226   :  { %637 = vmatprep.subr.mxu0 %v1969_v32  ;;  %708 = vmatprep.subr.mxu1 %v2035_v43 }
 0x227   :  { %638 = vmatpush1.msra.mxu0 %v1981_v34  ;;  %709 = vmatpush1.msra.mxu1 %v2047_v45 }
 0x228   :  { %639 = vmatprep.subr.mxu0 %v1993_v36  ;;  %710 = vmatprep.subr.mxu1 %v2059_v47 }
 0x229   :  { %640 = vmatpush1.msra.mxu0 %v2005_v38  ;;  %711 = vmatpush1.msra.mxu1 %v2071_v49 }
 0x22a   :  { %641 = vmatprep.subr.mxu0 %v2017_v40  ;;  %712 = vmatprep.subr.mxu1 %v2083_v51 }
 0x22b   :  { %642 = vmatpush1.msra.mxu0 %v2029_v42  ;;  %713 = vmatpush1.msra.mxu1 %v3194_v44 }
 0x22c   :  { %643 = vmatprep.subr.mxu0 %v3214_v53  ;;  %714 = vmatprep.subr.mxu1 %v3215_v55 }
 0x22d   :  { %644 = vmatpush1.msra.mxu0 %v3216_v60  ;;  %715 = vmatpush1.msra.mxu1 %v3217_v50 }
 0x22e   :  { %645 = vmatprep.subr.mxu0 %v3218_v48  ;;  %716 = vmatprep.subr.mxu1 %v3219_v61  ;;  %v1523_v48 = vld [vmem:[%s3101_s0 + $0x50] sm:$0xff] }
 0x22f   :  { %646 = vmatpush1.msra.mxu0 %v3220_v0  ;;  %717 = vmatpush1.msra.mxu1 %v3221_v52  ;;  %v3231_v52 = vld [vmem:[#allocation4_spill] sm:$0xff] }
 0x230   :  { %647 = vmatprep.subr.mxu0 %v3222_v54  ;;  %718 = vmatprep.subr.mxu1 %v3223_v62  ;;  %v3232_v54 = vld [vmem:[#allocation5_spill] sm:$0xff] }
 0x231   :  { %648 = vmatpush1.msra.mxu0 %v3224_v63  ;;  %719 = vmatpush1.msra.mxu1 %v3225_v9  ;;  %v1521_v9 = vld [vmem:[%s3101_s0 + $0x40] sm:$0xff] }
 0x232   :  { %649 = vmatprep.subr.mxu0 %v3226_v56  ;;  %720 = vmatprep.subr.mxu1 %v3227_v3  ;;  %v1522_v3 = vld [vmem:[%s3101_s0 + $0x48] sm:$0xff] }
 0x233   :  { %650 = vmatpush1.msra.mxu0 %v3228_v57  ;;  %683 = vmatprep.mubr.f32.mxu0 %v3229_v59 }
 0x234   :  { %721 = vmatpush1.msra.mxu1 %v3230_v58  ;;  %754 = vmatprep.mubr.f32.mxu1 %v3229_v59 }
 0x235   :  { %796 = vmatprep.subr.mxu0 %v3231_v52  ;;  %867 = vmatprep.subr.mxu1 %v3232_v54  ;;  %v1524_v52 = vld [vmem:[%s3101_s0 + $0x58] sm:$0xff] }
 0x2d4   :  { %v508_v63 = vpop.f32.mrf.mxu0  ;;  %v579_v58 = vpop.f32.mrf.mxu1 }
 0x2d5   :  { %v584_v57 = vadd.f32 %v1521_v9, %v508_v63  ;;  %v586_v63 = vadd.f32 %v1523_v48, %v579_v58 }
 0x2d6   :  { %v510_v56 = vpop.f32.mrf.mxu0  ;;  %v581_v54 = vpop.f32.mrf.mxu1 }
 0x2d7   :  { %v1525_v62 = vmul.f32 -1.442695, %v584_v57  ;;  %v585_v0 = vadd.f32 %v1522_v3, %v510_v56  ;;  %v587_v61 = vadd.f32 %v1524_v52, %v581_v54 }
 0x2d9   :  { %1602 = vpow2.f32 %v1525_v62  ;;  %v1526_v59 = vmul.f32 -1.442695, %v585_v0  ;;  %v1527_v50 = vmul.f32 -1.442695, %v587_v61 }
 0x2db   :  { %1604 = vpow2.f32 %v1526_v59 }
 0x2dc   :  { %1606 = vpow2.f32 %v1527_v50 }
 0x2e6   :  { %v1603_v60 = vpop.eup %1602 }
 0x2e7   :  { %v591_v9 = vadd.f32 1.0, %v1603_v60 }
 0x2e8   :  { %v1605_v57 = vpop.eup %1604 }
 0x2e9   :  { %1608 = vrcp.f32 %v591_v9  ;;  %v597_v62 = vadd.f32 1.0, %v1605_v57  ;;  %v1607_v0 = vpop.eup %1606  ;;  %v2520_v9 = vld [vmem:[%s3100_s1 + $0x1e0] sm:$0xff]  ;;  %v2532_v57 = vld [vmem:[%s3100_s1 + $0x1c8] sm:$0xff] }
 0x2ea   :  { %1610 = vtanh.f32 %v586_v63  ;;  %v604_v55 = vadd.f32 1.0, %v1607_v0  ;;  %v2544_v0 = vld [vmem:[%s3100_s1 + $0x1c0] sm:$0xff] }
 0x2eb   :  { %1612 = vrcp.f32 %v597_v62  ;;  %v2538_v62 = vld [vmem:[%s3100_s1 + $0x1d8] sm:$0xff] }
 0x2ec   :  { %1614 = vrcp.f32 %v604_v55 }
 0x2f6   :  { %v1609_v56 = vpop.eup %1608 }
 0x2f7   :  { %v1611_v3 = vpop.eup %1610 }
 0x2f8   :  { %v1613_v59 = vpop.eup %1612  ;;  %v608_v54 = vmul.f32 %v1611_v3, %v1609_v56  ;;  %v2550_v56 = vld [vmem:[%s3100_s1 + $0x1d0] sm:$0xff]  ;;  %v2556_v3 = vld [vmem:[%s3100_s1 + $0x1a8] sm:$0xff] }
 0x2f9   :  { %v607_v52 = vmul.f32 %v1613_v59, %v2336_v46  ;;  %v1615_v60 = vpop.eup %1614  ;;  %v2562_v59 = vld [vmem:[%s3100_s1 + $0x1b8] sm:$0xff] }
 0x2fb   :  { %v2421_v53 = vadd.f32 %v608_v54, %v607_v52  ;;  %v2568_v54 = vld [vmem:[%s3100_s1 + $0x1a0] sm:$0xff]  ;;  %v2574_v52 = vld [vmem:[%s3100_s1 + $0x1b0] sm:$0xff] }
 0x2fd   :  { %1616 = vtanh.f32 %v2421_v53 }
 0x30a   :  { %v1617_v48 = vpop.eup %1616 }
 0x30b   :  { %v611_v50 = vmul.f32 %v1617_v48, %v1615_v60  ;;  %v2580_v60 = vld [vmem:[%s3100_s1 + $0x188] sm:$0xff]  ;;  %v2586_v48 = vld [vmem:[%s3100_s1 + $0x198] sm:$0xff] }
 0x30d   :  { %1528 = vst [vmem:[%s3102_s2 + $0x10] sm:$0xff] %v611_v50  ;;  %684 = vmatmul.mubr.f32.vlgmr.msra.gmra.mxu0 %v611_v50  ;;  %755 = vmatmul.mubr.f32.vlgmr.msra.gmra.mxu1 %v611_v50  ;;  %v2592_v50 = vld [vmem:[%s3100_s1 + $0x180] sm:$0xff] }
 0x30e   :  { %797 = vmatpush1.msra.mxu0 %v1791_v1  ;;  %868 = vmatpush1.msra.mxu1 %v1845_v11  ;;  %v3233_v1 = vld [vmem:[#allocation6_spill] sm:$0xff] }
 0x30f   :  { %798 = vmatprep.subr.mxu0 %v1796_v2  ;;  %869 = vmatprep.subr.mxu1 %v1857_v13  ;;  %v3234_v2 = vld [vmem:[#allocation13_spill] sm:$0xff]  ;;  %v3241_v11 = vld [vmem:[#allocation10_spill] sm:$0xff]  ;;  %v3243_v13 = vld [vmem:[#allocation12_spill] sm:$0xff] }
 0x310   :  { %799 = vmatpush1.msra.mxu0 %v1804_v4  ;;  %870 = vmatpush1.msra.mxu1 %v1862_v14  ;;  %v3235_v4 = vld [vmem:[#allocation7_spill] sm:$0xff]  ;;  %v3244_v14 = vld [vmem:[#allocation20_spill] sm:$0xff] }
 0x311   :  { %800 = vmatprep.subr.mxu0 %v1810_v5  ;;  %871 = vmatprep.subr.mxu1 %v1874_v16  ;;  %v3236_v5 = vld [vmem:[#allocation15_spill] sm:$0xff]  ;;  %v3246_v16 = vld [vmem:[#allocation21_spill] sm:$0xff] }
 0x312   :  { %801 = vmatpush1.msra.mxu0 %v1816_v6  ;;  %872 = vmatpush1.msra.mxu1 %v1886_v18  ;;  %v3237_v6 = vld [vmem:[#allocation8_spill] sm:$0xff]  ;;  %v3248_v18 = vmov 0.0  }
 0x313   :  { %802 = vmatprep.subr.mxu0 %v1822_v7  ;;  %873 = vmatprep.subr.mxu1 %v1891_v19  ;;  %v3238_v7 = vld [vmem:[#allocation17_spill] sm:$0xff]  ;;  %v3249_v19 = vld [vmem:[#allocation22_spill] sm:$0xff] }
 0x314   :  { %803 = vmatpush1.msra.mxu0 %v1828_v8  ;;  %874 = vmatpush1.msra.mxu1 %v1903_v21  ;;  %v3239_v8 = vld [vmem:[#allocation9_spill] sm:$0xff] }
 0x315   :  { %804 = vmatprep.subr.mxu0 %v1839_v10  ;;  %875 = vmatprep.subr.mxu1 %v1915_v23  ;;  %v3240_v10 = vld [vmem:[#allocation18_spill] sm:$0xff]  ;;  %v3251_v21 = vld [vmem:[#allocation5_spill] sm:$0xff] }
 0x316   :  { %805 = vmatpush1.msra.mxu0 %v1851_v12  ;;  %876 = vmatpush1.msra.mxu1 %v1927_v25  ;;  %v3242_v12 = vld [vmem:[#allocation19_spill] sm:$0xff] }
 0x317   :  { %806 = vmatprep.subr.mxu0 %v1868_v15  ;;  %877 = vmatprep.subr.mxu1 %v1939_v27  ;;  %v3245_v15 = vld [vmem:[#allocation14_spill] sm:$0xff] }
 0x318   :  { %807 = vmatpush1.msra.mxu0 %v1880_v17  ;;  %878 = vmatpush1.msra.mxu1 %v1951_v29  ;;  %v3247_v17 = vld [vmem:[#allocation16_spill] sm:$0xff] }
 0x319   :  { %808 = vmatprep.subr.mxu0 %v1897_v20  ;;  %879 = vmatprep.subr.mxu1 %v1963_v31  ;;  %v2494_v20 = vld [vmem:[%s3100_s1 + $0x1e8] sm:$0xff]  ;;  %v1532_v31 = vld [vmem:[%s3101_s0 + $0x78] sm:$0xff] }
 0x31a   :  { %809 = vmatpush1.msra.mxu0 %v1909_v22  ;;  %880 = vmatpush1.msra.mxu1 %v1975_v33  ;;  %3250 = vst [vmem:[#allocation11_spill] sm:$0xff] %v2494_v20  ;;  %v1529_v22 = vld [vmem:[%s3101_s0 + $0x60] sm:$0xff] }
 0x31b   :  { %810 = vmatprep.subr.mxu0 %v1921_v24  ;;  %881 = vmatprep.subr.mxu1 %v1987_v35  ;;  %v1530_v24 = vld [vmem:[%s3101_s0 + $0x68] sm:$0xff] }
 0x31c   :  { %811 = vmatpush1.msra.mxu0 %v1933_v26  ;;  %882 = vmatpush1.msra.mxu1 %v1999_v37 }
 0x31d   :  { %812 = vmatprep.subr.mxu0 %v1945_v28  ;;  %883 = vmatprep.subr.mxu1 %v2011_v39 }
 0x31e   :  { %813 = vmatpush1.msra.mxu0 %v1957_v30  ;;  %884 = vmatpush1.msra.mxu1 %v2023_v41 }
 0x31f   :  { %814 = vmatprep.subr.mxu0 %v1969_v32  ;;  %885 = vmatprep.subr.mxu1 %v2035_v43 }
 0x320   :  { %815 = vmatpush1.msra.mxu0 %v1981_v34  ;;  %886 = vmatpush1.msra.mxu1 %v2047_v45  ;;  %v1531_v34 = vld [vmem:[%s3101_s0 + $0x70] sm:$0xff] }
 0x321   :  { %816 = vmatprep.subr.mxu0 %v1993_v36  ;;  %887 = vmatprep.subr.mxu1 %v2059_v47 }
 0x322   :  { %817 = vmatpush1.msra.mxu0 %v2005_v38  ;;  %888 = vmatpush1.msra.mxu1 %v2071_v49 }
 0x323   :  { %818 = vmatprep.subr.mxu0 %v2017_v40  ;;  %889 = vmatprep.subr.mxu1 %v2083_v51 }
 0x324   :  { %819 = vmatpush1.msra.mxu0 %v2029_v42  ;;  %890 = vmatpush1.msra.mxu1 %v3194_v44 }
 0x325   :  { %820 = vmatprep.subr.mxu0 %v3233_v1  ;;  %891 = vmatprep.subr.mxu1 %v3234_v2  ;;  %v2598_v1 = vld [vmem:[%s3100_s1 + $0x190] sm:$0xff] }
 0x326   :  { %821 = vmatpush1.msra.mxu0 %v3235_v4  ;;  %892 = vmatpush1.msra.mxu1 %v3236_v5  ;;  %v2604_v4 = vld [vmem:[%s3100_s1 + $0x168] sm:$0xff] }
 0x327   :  { %822 = vmatprep.subr.mxu0 %v3237_v6  ;;  %893 = vmatprep.subr.mxu1 %v3238_v7  ;;  %v2610_v6 = vld [vmem:[%s3100_s1 + $0x178] sm:$0xff] }
 0x328   :  { %823 = vmatpush1.msra.mxu0 %v3239_v8  ;;  %894 = vmatpush1.msra.mxu1 %v3240_v10  ;;  %v2616_v8 = vld [vmem:[%s3100_s1 + $0x160] sm:$0xff] }
 0x329   :  { %824 = vmatprep.subr.mxu0 %v3241_v11  ;;  %895 = vmatprep.subr.mxu1 %v3242_v12  ;;  %v2622_v11 = vld [vmem:[%s3100_s1 + $0x170] sm:$0xff] }
 0x32a   :  { %825 = vmatpush1.msra.mxu0 %v3243_v13  ;;  %896 = vmatpush1.msra.mxu1 %v3244_v14  ;;  %v2628_v13 = vld [vmem:[%s3100_s1 + $0x148] sm:$0xff] }
 0x32b   :  { %826 = vmatprep.subr.mxu0 %v3245_v15  ;;  %897 = vmatprep.subr.mxu1 %v3246_v16  ;;  %v2634_v15 = vld [vmem:[%s3100_s1 + $0x158] sm:$0xff] }
 0x32c   :  { %827 = vmatpush1.msra.mxu0 %v3247_v17  ;;  %860 = vmatprep.mubr.f32.mxu0 %v3248_v18  ;;  %v2640_v17 = vld [vmem:[%s3100_s1 + $0x140] sm:$0xff] }
 0x32d   :  { %898 = vmatpush1.msra.mxu1 %v3249_v19  ;;  %931 = vmatprep.mubr.f32.mxu1 %v3248_v18 }
 0x32e   :  { %973 = vmatprep.subr.mxu0 %v2494_v20  ;;  %1044 = vmatprep.subr.mxu1 %v3251_v21  ;;  %v2646_v21 = vld [vmem:[%s3100_s1 + $0x150] sm:$0xff] }
 0x3cd   :  { %v685_v23 = vpop.f32.mrf.mxu0  ;;  %v756_v29 = vpop.f32.mrf.mxu1 }
 0x3ce   :  { %v761_v25 = vadd.f32 %v1529_v22, %v685_v23  ;;  %v763_v37 = vadd.f32 %v1531_v34, %v756_v29  ;;  %v2652_v22 = vld [vmem:[%s3100_s1 + $0x128] sm:$0xff]  ;;  %v2658_v23 = vld [vmem:[%s3100_s1 + $0x138] sm:$0xff]  ;;  %v2694_v29 = vld [vmem:[%s3100_s1 + $0x110] sm:$0xff] }
 0x3cf   :  { %v687_v26 = vpop.f32.mrf.mxu0  ;;  %v758_v32 = vpop.f32.mrf.mxu1  ;;  %v2724_v34 = vld [vmem:[%s3100_s1 + $0xc8] sm:$0xff] }
 0x3d0   :  { %v1533_v27 = vmul.f32 -1.442695, %v761_v25  ;;  %v762_v28 = vadd.f32 %v1530_v24, %v687_v26  ;;  %v764_v33 = vadd.f32 %v1532_v31, %v758_v32  ;;  %v2664_v24 = vld [vmem:[%s3100_s1 + $0x120] sm:$0xff]  ;;  %v2670_v25 = vld [vmem:[%s3100_s1 + $0x130] sm:$0xff]  ;;  %v2676_v26 = vld [vmem:[%s3100_s1 + $0x108] sm:$0xff] }
 0x3d1   :  { %v2706_v31 = vld [vmem:[%s3100_s1 + $0xf8] sm:$0xff]  ;;  %v2712_v32 = vld [vmem:[%s3100_s1 + $0xe0] sm:$0xff] }
 0x3d2   :  { %1618 = vpow2.f32 %v1533_v27  ;;  %v1534_v30 = vmul.f32 -1.442695, %v762_v28  ;;  %v1535_v35 = vmul.f32 -1.442695, %v764_v33  ;;  %v2682_v27 = vld [vmem:[%s3100_s1 + $0x118] sm:$0xff]  ;;  %v2688_v28 = vld [vmem:[%s3100_s1 + $0x100] sm:$0xff] }
 0x3d3   :  { %v2718_v33 = vld [vmem:[%s3100_s1 + $0xf0] sm:$0xff] }
 0x3d4   :  { %1620 = vpow2.f32 %v1534_v30  ;;  %v2700_v30 = vld [vmem:[%s3100_s1 + $0xe8] sm:$0xff] }
 0x3d5   :  { %1622 = vpow2.f32 %v1535_v35  ;;  %v2730_v35 = vld [vmem:[%s3100_s1 + $0xd8] sm:$0xff] }
 0x3df   :  { %v1619_v36 = vpop.eup %1618 }
 0x3e0   :  { %v768_v38 = vadd.f32 1.0, %v1619_v36  ;;  %v2736_v36 = vld [vmem:[%s3100_s1 + $0xc0] sm:$0xff] }
 0x3e1   :  { %v1621_v39 = vpop.eup %1620 }
 0x3e2   :  { %1624 = vrcp.f32 %v768_v38  ;;  %v774_v40 = vadd.f32 1.0, %v1621_v39  ;;  %v1623_v41 = vpop.eup %1622  ;;  %v2748_v38 = vld [vmem:[%s3100_s1 + $0xa8] sm:$0xff]  ;;  %v2754_v39 = vld [vmem:[%s3100_s1 + $0xb8] sm:$0xff] }
 0x3e3   :  { %1626 = vtanh.f32 %v763_v37  ;;  %v781_v47 = vadd.f32 1.0, %v1623_v41  ;;  %v2742_v37 = vld [vmem:[%s3100_s1 + $0xd0] sm:$0xff] }
 0x3e4   :  { %1628 = vrcp.f32 %v774_v40  ;;  %v2760_v40 = vld [vmem:[%s3100_s1 + $0xa0] sm:$0xff]  ;;  %v2766_v41 = vld [vmem:[%s3100_s1 + $0xb0] sm:$0xff] }
 0x3e5   :  { %1630 = vrcp.f32 %v781_v47 }
 0x3ef   :  { %v1625_v42 = vpop.eup %1624 }
 0x3f0   :  { %v1627_v43 = vpop.eup %1626 }
 0x3f1   :  { %v1629_v45 = vpop.eup %1628  ;;  %v785_v49 = vmul.f32 %v1627_v43, %v1625_v42  ;;  %v2772_v42 = vld [vmem:[%s3100_s1 + $0x88] sm:$0xff]  ;;  %v2779_v43 = vld [vmem:[%s3100_s1 + $0x80] sm:$0xff] }
 0x3f2   :  { %v784_v46 = vmul.f32 %v1629_v45, %v2421_v53  ;;  %v1631_v61 = vpop.eup %1630  ;;  %v2526_v53 = vld [vmem:[%s3100_s1 + $0x1f0] sm:$0xff]  ;;  %v2786_v45 = vld [vmem:[%s3100_s1 + $0x68] sm:$0xff] }
 0x3f3   :  { %3252 = vst [vmem:[#allocation4_spill] sm:$0xff] %v2786_v45 }
 0x3f4   :  { %v2511_v55 = vadd.f32 %v785_v49, %v784_v46 }
 0x3f6   :  { %1632 = vtanh.f32 %v2511_v55 }
 0x403   :  { %v1633_v58 = vpop.eup %1632 }
 0x404   :  { %v788_v63 = vmul.f32 %v1633_v58, %v1631_v61 }
 0x406   :  { %1536 = vst [vmem:[%s3102_s2 + $0x18] sm:$0xff] %v788_v63  ;;  %861 = vmatmul.mubr.f32.vlgmr.msra.gmra.mxu0 %v788_v63  ;;  %932 = vmatmul.mubr.f32.vlgmr.msra.gmra.mxu1 %v788_v63 }
 0x407   :  { %974 = vmatpush1.msra.mxu0 %v2520_v9  ;;  %1045 = vmatpush1.msra.mxu1 %v2526_v53 }
 0x408   :  { %975 = vmatprep.subr.mxu0 %v2532_v57  ;;  %1046 = vmatprep.subr.mxu1 %v2538_v62 }
 0x409   :  { %976 = vmatpush1.msra.mxu0 %v2544_v0  ;;  %1047 = vmatpush1.msra.mxu1 %v2550_v56 }
 0x40a   :  { %977 = vmatprep.subr.mxu0 %v2556_v3  ;;  %1048 = vmatprep.subr.mxu1 %v2562_v59 }
 0x40b   :  { %978 = vmatpush1.msra.mxu0 %v2568_v54  ;;  %1049 = vmatpush1.msra.mxu1 %v2574_v52 }
 0x40c   :  { %979 = vmatprep.subr.mxu0 %v2580_v60  ;;  %1050 = vmatprep.subr.mxu1 %v2586_v48 }
 0x40d   :  { %980 = vmatpush1.msra.mxu0 %v2592_v50  ;;  %1051 = vmatpush1.msra.mxu1 %v2598_v1 }
 0x40e   :  { %981 = vmatprep.subr.mxu0 %v2604_v4  ;;  %1052 = vmatprep.subr.mxu1 %v2610_v6 }
 0x40f   :  { %982 = vmatpush1.msra.mxu0 %v2616_v8  ;;  %1053 = vmatpush1.msra.mxu1 %v2622_v11 }
 0x410   :  { %983 = vmatprep.subr.mxu0 %v2628_v13  ;;  %1054 = vmatprep.subr.mxu1 %v2634_v15 }
 0x411   :  { %984 = vmatpush1.msra.mxu0 %v2640_v17  ;;  %1055 = vmatpush1.msra.mxu1 %v2646_v21 }
 0x412   :  { %985 = vmatprep.subr.mxu0 %v2652_v22  ;;  %1056 = vmatprep.subr.mxu1 %v2658_v23 }
 0x413   :  { %986 = vmatpush1.msra.mxu0 %v2664_v24  ;;  %1057 = vmatpush1.msra.mxu1 %v2670_v25 }
 0x414   :  { %987 = vmatprep.subr.mxu0 %v2676_v26  ;;  %1058 = vmatprep.subr.mxu1 %v2682_v27 }
 0x415   :  { %988 = vmatpush1.msra.mxu0 %v2688_v28  ;;  %1059 = vmatpush1.msra.mxu1 %v2694_v29 }
 0x416   :  { %989 = vmatprep.subr.mxu0 %v2700_v30  ;;  %1060 = vmatprep.subr.mxu1 %v2706_v31 }
 0x417   :  { %990 = vmatpush1.msra.mxu0 %v2712_v32  ;;  %1061 = vmatpush1.msra.mxu1 %v2718_v33 }
 0x418   :  { %991 = vmatprep.subr.mxu0 %v2724_v34  ;;  %1062 = vmatprep.subr.mxu1 %v2730_v35 }
 0x419   :  { %992 = vmatpush1.msra.mxu0 %v2736_v36  ;;  %1063 = vmatpush1.msra.mxu1 %v2742_v37 }
 0x41a   :  { %993 = vmatprep.subr.mxu0 %v2748_v38  ;;  %1064 = vmatprep.subr.mxu1 %v2754_v39 }
 0x41b   :  { %994 = vmatpush1.msra.mxu0 %v2760_v40  ;;  %1065 = vmatpush1.msra.mxu1 %v2766_v41 }
 0x41c   :  { %995 = vmatprep.subr.mxu0 %v2772_v42  ;;  %1066 = vmatprep.subr.mxu1 %v2083_v51  ;;  %v2793_v51 = vld [vmem:[%s3100_s1 + $0x60] sm:$0xff] }
 0x41d   :  { %996 = vmatpush1.msra.mxu0 %v2779_v43  ;;  %1067 = vmatpush1.msra.mxu1 %v3194_v44  ;;  %3253 = vst [vmem:[#allocation6_spill] sm:$0xff] %v2793_v51  ;;  %v2800_v44 = vld [vmem:[%s3100_s1 + $0x48] sm:$0xff] }
 0x41e   :  { %997 = vmatprep.subr.mxu0 %v2786_v45  ;;  %1068 = vmatprep.subr.mxu1 %v3234_v2  ;;  %3254 = vst [vmem:[#allocation13_spill] sm:$0xff] %v2800_v44  ;;  %v2807_v2 = vld [vmem:[%s3100_s1 + $0x40] sm:$0xff] }
 0x41f   :  { %998 = vmatpush1.msra.mxu0 %v2793_v51  ;;  %1069 = vmatpush1.msra.mxu1 %v3236_v5  ;;  %3255 = vst [vmem:[#allocation7_spill] sm:$0xff] %v2807_v2  ;;  %v2814_v5 = vld [vmem:[%s3100_s1 + $0x28] sm:$0xff] }
 0x420   :  { %999 = vmatprep.subr.mxu0 %v2800_v44  ;;  %1070 = vmatprep.subr.mxu1 %v3238_v7  ;;  %3256 = vst [vmem:[#allocation15_spill] sm:$0xff] %v2814_v5  ;;  %v2821_v7 = vld [vmem:[%s3100_s1 + $0x20] sm:$0xff] }
 0x421   :  { %1000 = vmatpush1.msra.mxu0 %v2807_v2  ;;  %1071 = vmatpush1.msra.mxu1 %v3240_v10  ;;  %3257 = vst [vmem:[#allocation8_spill] sm:$0xff] %v2821_v7  ;;  %v2828_v10 = vld [vmem:[%s3100_s1 + $0x8] sm:$0xff] }
 0x422   :  { %1001 = vmatprep.subr.mxu0 %v2814_v5  ;;  %1072 = vmatprep.subr.mxu1 %v3242_v12  ;;  %3258 = vst [vmem:[#allocation17_spill] sm:$0xff] %v2828_v10  ;;  %v2835_v12 = vld [vmem:[%s3100_s1] sm:$0xff] }
 0x423   :  { %1002 = vmatpush1.msra.mxu0 %v2821_v7  ;;  %1073 = vmatpush1.msra.mxu1 %v3244_v14  ;;  %3259 = vst [vmem:[#allocation9_spill] sm:$0xff] %v2835_v12  ;;  %v2845_v14 = vld [vmem:[%s3100_s1 + $0x1f8] sm:$0xff] }
 0x424   :  { %1003 = vmatprep.subr.mxu0 %v2828_v10  ;;  %1074 = vmatprep.subr.mxu1 %v3246_v16  ;;  %3260 = vst [vmem:[#allocation18_spill] sm:$0xff] %v2845_v14  ;;  %v1537_v16 = vld [vmem:[%s3101_s0 + $0x80] sm:$0xff]  ;;  %v1539_v10 = vld [vmem:[%s3101_s0 + $0x90] sm:$0xff] }
 0x425   :  { %1004 = vmatpush1.msra.mxu0 %v2835_v12  ;;  %1037 = vmatprep.mubr.f32.mxu0 %v3248_v18 }
 0x426   :  { %1075 = vmatpush1.msra.mxu1 %v3249_v19  ;;  %1108 = vmatprep.mubr.f32.mxu1 %v3248_v18  ;;  %v1538_v19 = vld [vmem:[%s3101_s0 + $0x88] sm:$0xff] }
 0x427   :  { %1150 = vmatprep.subr.mxu0 %v2494_v20  ;;  %1221 = vmatprep.subr.mxu1 %v2845_v14  ;;  %v1540_v14 = vld [vmem:[%s3101_s0 + $0x98] sm:$0xff] }
 0x4c6   :  { %v862_v47 = vpop.f32.mrf.mxu0  ;;  %v933_v63 = vpop.f32.mrf.mxu1 }
 0x4c7   :  { %v938_v49 = vadd.f32 %v1537_v16, %v862_v47  ;;  %v940_v16 = vadd.f32 %v1539_v10, %v933_v63  ;;  %v2934_v63 = vld [vmem:[%s3100_s1 + $0x70] sm:$0xff] }
 0x4c8   :  { %v864_v46 = vpop.f32.mrf.mxu0  ;;  %v935_v18 = vpop.f32.mrf.mxu1  ;;  %3262 = vst [vmem:[#allocation19_spill] sm:$0xff] %v2934_v63 }
 0x4c9   :  { %v1541_v61 = vmul.f32 -1.442695, %v938_v49  ;;  %v939_v58 = vadd.f32 %v1538_v19, %v864_v46  ;;  %v941_v12 = vadd.f32 %v1540_v14, %v935_v18 }
 0x4cb   :  { %1634 = vpow2.f32 %v1541_v61  ;;  %v1542_v20 = vmul.f32 -1.442695, %v939_v58  ;;  %v1543_v7 = vmul.f32 -1.442695, %v941_v12  ;;  %v2927_v12 = vld [vmem:[%s3100_s1 + $0x78] sm:$0xff] }
 0x4cc   :  { %3261 = vst [vmem:[#allocation10_spill] sm:$0xff] %v2927_v12 }
 0x4cd   :  { %1636 = vpow2.f32 %v1542_v20 }
 0x4ce   :  { %1638 = vpow2.f32 %v1543_v7 }
 0x4d8   :  { %v1635_v5 = vpop.eup %1634 }
 0x4d9   :  { %v945_v47 = vadd.f32 1.0, %v1635_v5 }
 0x4da   :  { %v1637_v49 = vpop.eup %1636 }
 0x4db   :  { %1640 = vrcp.f32 %v945_v47  ;;  %v951_v19 = vadd.f32 1.0, %v1637_v49  ;;  %v1639_v20 = vpop.eup %1638  ;;  %v2941_v47 = vld [vmem:[%s3100_s1 + $0x58] sm:$0xff] }
 0x4dc   :  { %1642 = vtanh.f32 %v940_v16  ;;  %v958_v2 = vadd.f32 1.0, %v1639_v20  ;;  %v3263_v16 = vld [vmem:[#allocation13_spill] sm:$0xff]  ;;  %3264 = vst [vmem:[#allocation12_spill] sm:$0xff] %v2941_v47  ;;  %v3265_v49 = vld [vmem:[#allocation7_spill] sm:$0xff] }
 0x4dd   :  { %1644 = vrcp.f32 %v951_v19  ;;  %v2948_v19 = vld [vmem:[%s3100_s1 + $0x50] sm:$0xff]  ;;  %v3267_v20 = vld [vmem:[#allocation15_spill] sm:$0xff] }
 0x4de   :  { %1646 = vrcp.f32 %v958_v2  ;;  %v2920_v2 = vld [vmem:[%s3100_s1 + $0x90] sm:$0xff]  ;;  %3266 = vst [vmem:[#allocation20_spill] sm:$0xff] %v2948_v19 }
 0x4e8   :  { %v1641_v46 = vpop.eup %1640 }
 0x4e9   :  { %v1643_v61 = vpop.eup %1642 }
 0x4ea   :  { %v1645_v58 = vpop.eup %1644  ;;  %v962_v18 = vmul.f32 %v1643_v61, %v1641_v46  ;;  %v2955_v46 = vld [vmem:[%s3100_s1 + $0x38] sm:$0xff]  ;;  %v3269_v61 = vld [vmem:[#allocation8_spill] sm:$0xff] }
 0x4eb   :  { %v961_v14 = vmul.f32 %v1645_v58, %v2511_v55  ;;  %v1647_v5 = vpop.eup %1646  ;;  %v2913_v55 = vld [vmem:[%s3100_s1 + $0x98] sm:$0xff]  ;;  %3268 = vst [vmem:[#allocation14_spill] sm:$0xff] %v2955_v46  ;;  %v2962_v58 = vld [vmem:[%s3100_s1 + $0x30] sm:$0xff] }
 0x4ec   :  { %3270 = vst [vmem:[#allocation21_spill] sm:$0xff] %v2962_v58 }
 0x4ed   :  { %v2861_v44 = vadd.f32 %v962_v18, %v961_v14  ;;  %v3271_v18 = vld [vmem:[#allocation17_spill] sm:$0xff]  ;;  %v2969_v14 = vld [vmem:[%s3100_s1 + $0x18] sm:$0xff] }
 0x4ee   :  { %3272 = vst [vmem:[#allocation16_spill] sm:$0xff] %v2969_v14 }
 0x4ef   :  { %1648 = vtanh.f32 %v2861_v44 }
 0x4fc   :  { %v1649_v10 = vpop.eup %1648 }
 0x4fd   :  { %v965_v7 = vmul.f32 %v1649_v10, %v1647_v5  ;;  %v3273_v5 = vld [vmem:[#allocation9_spill] sm:$0xff]  ;;  %v3274_v10 = vmov 0.0  }
 0x4ff   :  { %1544 = vst [vmem:[%s3102_s2 + $0x20] sm:$0xff] %v965_v7  ;;  %1038 = vmatmul.mubr.f32.vlgmr.msra.gmra.mxu0 %v965_v7  ;;  %1109 = vmatmul.mubr.f32.vlgmr.msra.gmra.mxu1 %v965_v7  ;;  %v2977_v7 = vld [vmem:[%s3100_s1 + $0x10] sm:$0xff] }
 0x500   :  { %1151 = vmatpush1.msra.mxu0 %v2520_v9  ;;  %1222 = vmatpush1.msra.mxu1 %v2526_v53  ;;  %3275 = vst [vmem:[#allocation22_spill] sm:$0xff] %v2977_v7 }
 0x501   :  { %1152 = vmatprep.subr.mxu0 %v2532_v57  ;;  %1223 = vmatprep.subr.mxu1 %v2538_v62 }
 0x502   :  { %1153 = vmatpush1.msra.mxu0 %v2544_v0  ;;  %1224 = vmatpush1.msra.mxu1 %v2550_v56 }
 0x503   :  { %1154 = vmatprep.subr.mxu0 %v2556_v3  ;;  %1225 = vmatprep.subr.mxu1 %v2562_v59 }
 0x504   :  { %1155 = vmatpush1.msra.mxu0 %v2568_v54  ;;  %1226 = vmatpush1.msra.mxu1 %v2574_v52 }
 0x505   :  { %1156 = vmatprep.subr.mxu0 %v2580_v60  ;;  %1227 = vmatprep.subr.mxu1 %v2586_v48 }
 0x506   :  { %1157 = vmatpush1.msra.mxu0 %v2592_v50  ;;  %1228 = vmatpush1.msra.mxu1 %v2598_v1 }
 0x507   :  { %1158 = vmatprep.subr.mxu0 %v2604_v4  ;;  %1229 = vmatprep.subr.mxu1 %v2610_v6 }
 0x508   :  { %1159 = vmatpush1.msra.mxu0 %v2616_v8  ;;  %1230 = vmatpush1.msra.mxu1 %v2622_v11 }
 0x509   :  { %1160 = vmatprep.subr.mxu0 %v2628_v13  ;;  %1231 = vmatprep.subr.mxu1 %v2634_v15 }
 0x50a   :  { %1161 = vmatpush1.msra.mxu0 %v2640_v17  ;;  %1232 = vmatpush1.msra.mxu1 %v2646_v21 }
 0x50b   :  { %1162 = vmatprep.subr.mxu0 %v2652_v22  ;;  %1233 = vmatprep.subr.mxu1 %v2658_v23 }
 0x50c   :  { %1163 = vmatpush1.msra.mxu0 %v2664_v24  ;;  %1234 = vmatpush1.msra.mxu1 %v2670_v25 }
 0x50d   :  { %1164 = vmatprep.subr.mxu0 %v2676_v26  ;;  %1235 = vmatprep.subr.mxu1 %v2682_v27 }
 0x50e   :  { %1165 = vmatpush1.msra.mxu0 %v2688_v28  ;;  %1236 = vmatpush1.msra.mxu1 %v2694_v29 }
 0x50f   :  { %1166 = vmatprep.subr.mxu0 %v2700_v30  ;;  %1237 = vmatprep.subr.mxu1 %v2706_v31 }
 0x510   :  { %1167 = vmatpush1.msra.mxu0 %v2712_v32  ;;  %1238 = vmatpush1.msra.mxu1 %v2718_v33 }
 0x511   :  { %1168 = vmatprep.subr.mxu0 %v2724_v34  ;;  %1239 = vmatprep.subr.mxu1 %v2730_v35 }
 0x512   :  { %1169 = vmatpush1.msra.mxu0 %v2736_v36  ;;  %1240 = vmatpush1.msra.mxu1 %v2742_v37 }
 0x513   :  { %1170 = vmatprep.subr.mxu0 %v2748_v38  ;;  %1241 = vmatprep.subr.mxu1 %v2754_v39 }
 0x514   :  { %1171 = vmatpush1.msra.mxu0 %v2760_v40  ;;  %1242 = vmatpush1.msra.mxu1 %v2766_v41 }
 0x515   :  { %1172 = vmatprep.subr.mxu0 %v2772_v42  ;;  %1243 = vmatprep.subr.mxu1 %v2913_v55 }
 0x516   :  { %1173 = vmatpush1.msra.mxu0 %v2779_v43  ;;  %1244 = vmatpush1.msra.mxu1 %v2920_v2 }
 0x517   :  { %1174 = vmatprep.subr.mxu0 %v2786_v45  ;;  %1245 = vmatprep.subr.mxu1 %v2927_v12 }
 0x518   :  { %1175 = vmatpush1.msra.mxu0 %v2793_v51  ;;  %1246 = vmatpush1.msra.mxu1 %v2934_v63 }
 0x519   :  { %1176 = vmatprep.subr.mxu0 %v3263_v16  ;;  %1247 = vmatprep.subr.mxu1 %v2941_v47  ;;  %v1547_v16 = vld [vmem:[%s3101_s0 + $0xb0] sm:$0xff] }
 0x51a   :  { %1177 = vmatpush1.msra.mxu0 %v3265_v49  ;;  %1248 = vmatpush1.msra.mxu1 %v2948_v19 }
 0x51b   :  { %1178 = vmatprep.subr.mxu0 %v3267_v20  ;;  %1249 = vmatprep.subr.mxu1 %v2955_v46 }
 0x51c   :  { %1179 = vmatpush1.msra.mxu0 %v3269_v61  ;;  %1250 = vmatpush1.msra.mxu1 %v2962_v58  ;;  %v3277_v58 = vld [vmem:[#allocation18_spill] sm:$0xff]  ;;  %v1546_v61 = vld [vmem:[%s3101_s0 + $0xa8] sm:$0xff] }
 0x51d   :  { %1180 = vmatprep.subr.mxu0 %v3271_v18  ;;  %1251 = vmatprep.subr.mxu1 %v2969_v14  ;;  %v3276_v18 = vld [vmem:[#allocation11_spill] sm:$0xff]  ;;  %v1545_v14 = vld [vmem:[%s3101_s0 + $0xa0] sm:$0xff] }
 0x51e   :  { %1181 = vmatpush1.msra.mxu0 %v3273_v5  ;;  %1214 = vmatprep.mubr.f32.mxu0 %v3274_v10 }
 0x51f   :  { %1252 = vmatpush1.msra.mxu1 %v2977_v7  ;;  %1285 = vmatprep.mubr.f32.mxu1 %v3274_v10 }
 0x520   :  { %1327 = vmatprep.subr.mxu0 %v3276_v18  ;;  %1398 = vmatprep.subr.mxu1 %v3277_v58  ;;  %v1548_v58 = vld [vmem:[%s3101_s0 + $0xb8] sm:$0xff] }
 0x5bf   :  { %v1039_v5 = vpop.f32.mrf.mxu0  ;;  %v1110_v7 = vpop.f32.mrf.mxu1 }
 0x5c0   :  { %v1115_v46 = vadd.f32 %v1545_v14, %v1039_v5  ;;  %v1117_v14 = vadd.f32 %v1547_v16, %v1110_v7 }
 0x5c1   :  { %v1041_v20 = vpop.f32.mrf.mxu0  ;;  %v1112_v18 = vpop.f32.mrf.mxu1 }
 0x5c2   :  { %v1549_v19 = vmul.f32 -1.442695, %v1115_v46  ;;  %v1116_v49 = vadd.f32 %v1546_v61, %v1041_v20  ;;  %v1118_v47 = vadd.f32 %v1548_v58, %v1112_v18 }
 0x5c4   :  { %1650 = vpow2.f32 %v1549_v19  ;;  %v1550_v10 = vmul.f32 -1.442695, %v1116_v49  ;;  %v1551_v63 = vmul.f32 -1.442695, %v1118_v47 }
 0x5c6   :  { %1652 = vpow2.f32 %v1550_v10 }
 0x5c7   :  { %1654 = vpow2.f32 %v1551_v63 }
 0x5d1   :  { %v1651_v51 = vpop.eup %1650 }
 0x5d2   :  { %v1122_v5 = vadd.f32 1.0, %v1651_v51 }
 0x5d3   :  { %v1653_v46 = vpop.eup %1652 }
 0x5d4   :  { %1656 = vrcp.f32 %v1122_v5  ;;  %v1128_v19 = vadd.f32 1.0, %v1653_v46  ;;  %v1655_v49 = vpop.eup %1654 }
 0x5d5   :  { %1658 = vtanh.f32 %v1117_v14  ;;  %v1135_v12 = vadd.f32 1.0, %v1655_v49 }
 0x5d6   :  { %1660 = vrcp.f32 %v1128_v19 }
 0x5d7   :  { %1662 = vrcp.f32 %v1135_v12  ;;  %v1561_v12 = vld [vmem:[%s3101_s0 + $0xe0] sm:$0xff] }
 0x5e1   :  { %v1657_v20 = vpop.eup %1656 }
 0x5e2   :  { %v1659_v61 = vpop.eup %1658 }
 0x5e3   :  { %v1661_v10 = vpop.eup %1660  ;;  %v1139_v58 = vmul.f32 %v1659_v61, %v1657_v20  ;;  %v1564_v20 = vld [vmem:[%s3101_s0 + $0xf8] sm:$0xff] }
 0x5e4   :  { %v1138_v18 = vmul.f32 %v1661_v10, %v2861_v44  ;;  %v1663_v51 = vpop.eup %1662 }
 0x5e6   :  { %v2996_v45 = vadd.f32 %v1139_v58, %v1138_v18  ;;  %v1563_v58 = vld [vmem:[%s3101_s0 + $0xf0] sm:$0xff] }
 0x5e8   :  { %1664 = vtanh.f32 %v2996_v45 }
 0x5f5   :  { %v1665_v16 = vpop.eup %1664 }
 0x5f6   :  { %v1142_v63 = vmul.f32 %v1665_v16, %v1663_v51 }
 0x5f8   :  { %1552 = vst [vmem:[%s3102_s2 + $0x28] sm:$0xff] %v1142_v63  ;;  %1215 = vmatmul.mubr.f32.vlgmr.msra.gmra.mxu0 %v1142_v63  ;;  %1286 = vmatmul.mubr.f32.vlgmr.msra.gmra.mxu1 %v1142_v63 }
 0x5f9   :  { %1328 = vmatpush1.msra.mxu0 %v2520_v9  ;;  %1399 = vmatpush1.msra.mxu1 %v2526_v53  ;;  %v3278_v9 = vld [vmem:[#allocation4_spill] sm:$0xff]  ;;  %v3279_v53 = vld [vmem:[#allocation10_spill] sm:$0xff] }
 0x5fa   :  { %1329 = vmatprep.subr.mxu0 %v2532_v57  ;;  %1400 = vmatprep.subr.mxu1 %v2538_v62  ;;  %v3280_v57 = vld [vmem:[#allocation6_spill] sm:$0xff]  ;;  %v3281_v62 = vld [vmem:[#allocation19_spill] sm:$0xff] }
 0x5fb   :  { %1330 = vmatpush1.msra.mxu0 %v2544_v0  ;;  %1401 = vmatpush1.msra.mxu1 %v2550_v56  ;;  %v3282_v0 = vld [vmem:[#allocation13_spill] sm:$0xff]  ;;  %v3283_v56 = vld [vmem:[#allocation12_spill] sm:$0xff] }
 0x5fc   :  { %1331 = vmatprep.subr.mxu0 %v2556_v3  ;;  %1402 = vmatprep.subr.mxu1 %v2562_v59  ;;  %v3284_v3 = vld [vmem:[#allocation7_spill] sm:$0xff]  ;;  %v3285_v59 = vld [vmem:[#allocation20_spill] sm:$0xff] }
 0x5fd   :  { %1332 = vmatpush1.msra.mxu0 %v2568_v54  ;;  %1403 = vmatpush1.msra.mxu1 %v2574_v52  ;;  %v3286_v54 = vld [vmem:[#allocation15_spill] sm:$0xff]  ;;  %v3287_v52 = vld [vmem:[#allocation14_spill] sm:$0xff] }
 0x5fe   :  { %1333 = vmatprep.subr.mxu0 %v2580_v60  ;;  %1404 = vmatprep.subr.mxu1 %v2586_v48  ;;  %v3288_v60 = vld [vmem:[#allocation8_spill] sm:$0xff]  ;;  %v3289_v48 = vld [vmem:[#allocation21_spill] sm:$0xff] }
 0x5ff   :  { %1334 = vmatpush1.msra.mxu0 %v2592_v50  ;;  %1405 = vmatpush1.msra.mxu1 %v2598_v1  ;;  %v3290_v50 = vld [vmem:[#allocation17_spill] sm:$0xff]  ;;  %v3291_v1 = vld [vmem:[#allocation16_spill] sm:$0xff] }
 0x600   :  { %1335 = vmatprep.subr.mxu0 %v2604_v4  ;;  %1406 = vmatprep.subr.mxu1 %v2610_v6  ;;  %v3292_v4 = vld [vmem:[#allocation9_spill] sm:$0xff]  ;;  %v3293_v6 = vmov 0.0  }
 0x601   :  { %1336 = vmatpush1.msra.mxu0 %v2616_v8  ;;  %1407 = vmatpush1.msra.mxu1 %v2622_v11  ;;  %v3294_v8 = vld [vmem:[#allocation22_spill] sm:$0xff]  ;;  %v1553_v11 = vld [vmem:[%s3101_s0 + $0xc0] sm:$0xff] }
 0x602   :  { %1337 = vmatprep.subr.mxu0 %v2628_v13  ;;  %1408 = vmatprep.subr.mxu1 %v2634_v15  ;;  %v1554_v15 = vld [vmem:[%s3101_s0 + $0xc8] sm:$0xff] }
 0x603   :  { %1338 = vmatpush1.msra.mxu0 %v2640_v17  ;;  %1409 = vmatpush1.msra.mxu1 %v2646_v21 }
 0x604   :  { %1339 = vmatprep.subr.mxu0 %v2652_v22  ;;  %1410 = vmatprep.subr.mxu1 %v2658_v23 }
 0x605   :  { %1340 = vmatpush1.msra.mxu0 %v2664_v24  ;;  %1411 = vmatpush1.msra.mxu1 %v2670_v25 }
 0x606   :  { %1341 = vmatprep.subr.mxu0 %v2676_v26  ;;  %1412 = vmatprep.subr.mxu1 %v2682_v27  ;;  %v1556_v26 = vld [vmem:[%s3101_s0 + $0xd8] sm:$0xff] }
 0x607   :  { %1342 = vmatpush1.msra.mxu0 %v2688_v28  ;;  %1413 = vmatpush1.msra.mxu1 %v2694_v29  ;;  %v1555_v29 = vld [vmem:[%s3101_s0 + $0xd0] sm:$0xff] }
 0x608   :  { %1343 = vmatprep.subr.mxu0 %v2700_v30  ;;  %1414 = vmatprep.subr.mxu1 %v2706_v31 }
 0x609   :  { %1344 = vmatpush1.msra.mxu0 %v2712_v32  ;;  %1415 = vmatpush1.msra.mxu1 %v2718_v33 }
 0x60a   :  { %1345 = vmatprep.subr.mxu0 %v2724_v34  ;;  %1416 = vmatprep.subr.mxu1 %v2730_v35 }
 0x60b   :  { %1346 = vmatpush1.msra.mxu0 %v2736_v36  ;;  %1417 = vmatpush1.msra.mxu1 %v2742_v37 }
 0x60c   :  { %1347 = vmatprep.subr.mxu0 %v2748_v38  ;;  %1418 = vmatprep.subr.mxu1 %v2754_v39 }
 0x60d   :  { %1348 = vmatpush1.msra.mxu0 %v2760_v40  ;;  %1419 = vmatpush1.msra.mxu1 %v2766_v41 }
 0x60e   :  { %1349 = vmatprep.subr.mxu0 %v2772_v42  ;;  %1420 = vmatprep.subr.mxu1 %v2913_v55 }
 0x60f   :  { %1350 = vmatpush1.msra.mxu0 %v2779_v43  ;;  %1421 = vmatpush1.msra.mxu1 %v2920_v2 }
 0x610   :  { %1351 = vmatprep.subr.mxu0 %v3278_v9  ;;  %1422 = vmatprep.subr.mxu1 %v3279_v53 }
 0x611   :  { %1352 = vmatpush1.msra.mxu0 %v3280_v57  ;;  %1423 = vmatpush1.msra.mxu1 %v3281_v62 }
 0x612   :  { %1353 = vmatprep.subr.mxu0 %v3282_v0  ;;  %1424 = vmatprep.subr.mxu1 %v3283_v56 }
 0x613   :  { %1354 = vmatpush1.msra.mxu0 %v3284_v3  ;;  %1425 = vmatpush1.msra.mxu1 %v3285_v59 }
 0x614   :  { %1355 = vmatprep.subr.mxu0 %v3286_v54  ;;  %1426 = vmatprep.subr.mxu1 %v3287_v52 }
 0x615   :  { %1356 = vmatpush1.msra.mxu0 %v3288_v60  ;;  %1427 = vmatpush1.msra.mxu1 %v3289_v48 }
 0x616   :  { %1357 = vmatprep.subr.mxu0 %v3290_v50  ;;  %1428 = vmatprep.subr.mxu1 %v3291_v1 }
 0x617   :  { %1358 = vmatpush1.msra.mxu0 %v3292_v4  ;;  %1391 = vmatprep.mubr.f32.mxu0 %v3293_v6 }
 0x618   :  { %1429 = vmatpush1.msra.mxu1 %v3294_v8  ;;  %1462 = vmatprep.mubr.f32.mxu1 %v3293_v6 }
 0x6b8   :  { %v1216_v13 = vpop.f32.mrf.mxu0  ;;  %v1287_v24 = vpop.f32.mrf.mxu1 }
 0x6b9   :  { %v1292_v17 = vadd.f32 %v1553_v11, %v1216_v13  ;;  %v1294_v32 = vadd.f32 %v1555_v29, %v1287_v24 }
 0x6ba   :  { %v1218_v21 = vpop.f32.mrf.mxu0  ;;  %v1289_v27 = vpop.f32.mrf.mxu1 }
 0x6bb   :  { %v1557_v22 = vmul.f32 -1.442695, %v1292_v17  ;;  %v1293_v23 = vadd.f32 %v1554_v15, %v1218_v21  ;;  %v1295_v28 = vadd.f32 %v1556_v26, %v1289_v27 }
 0x6bd   :  { %1666 = vpow2.f32 %v1557_v22  ;;  %v1558_v25 = vmul.f32 -1.442695, %v1293_v23  ;;  %v1559_v30 = vmul.f32 -1.442695, %v1295_v28 }
 0x6bf   :  { %1668 = vpow2.f32 %v1558_v25 }
 0x6c0   :  { %1670 = vpow2.f32 %v1559_v30 }
 0x6ca   :  { %v1667_v31 = vpop.eup %1666 }
 0x6cb   :  { %v1299_v33 = vadd.f32 1.0, %v1667_v31 }
 0x6cc   :  { %v1669_v34 = vpop.eup %1668 }
 0x6cd   :  { %1672 = vrcp.f32 %v1299_v33  ;;  %v1305_v35 = vadd.f32 1.0, %v1669_v34  ;;  %v1671_v36 = vpop.eup %1670 }
 0x6ce   :  { %1674 = vtanh.f32 %v1294_v32  ;;  %v1312_v40 = vadd.f32 1.0, %v1671_v36 }
 0x6cf   :  { %1676 = vrcp.f32 %v1305_v35 }
 0x6d0   :  { %1678 = vrcp.f32 %v1312_v40 }
 0x6da   :  { %v1673_v37 = vpop.eup %1672 }
 0x6db   :  { %v1675_v38 = vpop.eup %1674 }
 0x6dc   :  { %v1677_v39 = vpop.eup %1676  ;;  %v1316_v41 = vmul.f32 %v1675_v38, %v1673_v37 }
 0x6dd   :  { %v1315_v42 = vmul.f32 %v1677_v39, %v2996_v45  ;;  %v1679_v44 = vpop.eup %1678  ;;  %v1562_v45 = vld [vmem:[%s3101_s0 + $0xe8] sm:$0xff] }
 0x6df   :  { %v1317_v43 = vadd.f32 %v1316_v41, %v1315_v42 }
 0x6e1   :  { %1680 = vtanh.f32 %v1317_v43 }
 0x6ee   :  { %v1681_v55 = vpop.eup %1680 }
 0x6ef   :  { %v1319_v2 = vmul.f32 %v1681_v55, %v1679_v44 }
 0x6f1   :  { %1560 = vst [vmem:[%s3102_s2 + $0x30] sm:$0xff] %v1319_v2  ;;  %1392 = vmatmul.mubr.f32.vlgmr.msra.gmra.mxu0 %v1319_v2  ;;  %1463 = vmatmul.mubr.f32.vlgmr.msra.gmra.mxu1 %v1319_v2 }
 0x7b1   :  { %v1393_v47 = vpop.f32.mrf.mxu0  ;;  %v1464_v19 = vpop.f32.mrf.mxu1 }
 0x7b2   :  { %v1469_v7 = vadd.f32 %v1561_v12, %v1393_v47  ;;  %v1471_v16 = vadd.f32 %v1563_v58, %v1464_v19 }
 0x7b3   :  { %v1395_v14 = vpop.f32.mrf.mxu0  ;;  %v1466_v61 = vpop.f32.mrf.mxu1 }
 0x7b4   :  { %v1565_v5 = vmul.f32 -1.442695, %v1469_v7  ;;  %v1470_v46 = vadd.f32 %v1562_v45, %v1395_v14  ;;  %v1472_v10 = vadd.f32 %v1564_v20, %v1466_v61 }
 0x7b6   :  { %1682 = vpow2.f32 %v1565_v5  ;;  %v1566_v49 = vmul.f32 -1.442695, %v1470_v46  ;;  %v1567_v18 = vmul.f32 -1.442695, %v1472_v10 }
 0x7b8   :  { %1684 = vpow2.f32 %v1566_v49 }
 0x7b9   :  { %1686 = vpow2.f32 %v1567_v18 }
 0x7c3   :  { %v1683_v51 = vpop.eup %1682 }
 0x7c4   :  { %v1476_v63 = vadd.f32 1.0, %v1683_v51 }
 0x7c5   :  { %v1685_v9 = vpop.eup %1684 }
 0x7c6   :  { %1688 = vrcp.f32 %v1476_v63  ;;  %v1482_v53 = vadd.f32 1.0, %v1685_v9  ;;  %v1687_v57 = vpop.eup %1686 }
 0x7c7   :  { %1690 = vtanh.f32 %v1471_v16  ;;  %v1489_v3 = vadd.f32 1.0, %v1687_v57 }
 0x7c8   :  { %1692 = vrcp.f32 %v1482_v53 }
 0x7c9   :  { %1694 = vrcp.f32 %v1489_v3 }
 0x7d3   :  { %v1689_v62 = vpop.eup %1688 }
 0x7d4   :  { %v1691_v0 = vpop.eup %1690 }
 0x7d5   :  { %v1693_v56 = vpop.eup %1692  ;;  %v1493_v59 = vmul.f32 %v1691_v0, %v1689_v62 }
 0x7d6   :  { %v1492_v54 = vmul.f32 %v1693_v56, %v1317_v43  ;;  %v1695_v60 = vpop.eup %1694 }
 0x7d8   :  { %v1494_v52 = vadd.f32 %v1493_v59, %v1492_v54 }
 0x7da   :  { %1696 = vtanh.f32 %v1494_v52  ;;  %1501 = vst [vmem:[%s3103_s3] sm:$0xff] %v1494_v52 }
 0x7e7   :  { %v1697_v48 = vpop.eup %1696 }
 0x7e8   :  { %v1496_v50 = vmul.f32 %v1697_v48, %v1695_v60 }
 0x7ea   :  { %1568 = vst [vmem:[%s3102_s2 + $0x38] sm:$0xff] %v1496_v50 }

</bundles_post_ra>
